<compile_context>
chip_gen: v5e
topology: v5e:2x2
jax: 0.10.0
libtpu: 0.0.40
codegen_flags: <defaults>
</compile_context>

<pallas_src>
import functools
import math

import jax
import jax.numpy as jnp
import numpy as np
from jax import lax
from jax.experimental import pallas as pl
from jax.experimental.pallas import tpu as pltpu


# TODO(synk): on v5e (HBM-roofline bound) flip STREAM_BF16=True to halve the
# per-step DMA bytes of the field + halos; re-validate finite-difference
# numerics against the 2e-3 tolerance before shipping.
STREAM_BF16 = False


# --------------------------------------------------------------------------
# Helpers
# --------------------------------------------------------------------------
def _round_up(x, m):
    return (x + m - 1) // m * m


def _vmem_limits():
    """(live-VMEM budget for tile sizing, scoped vmem_limit_bytes), per chip gen."""
    cap = 64 << 20
    try:
        cap = int(getattr(pltpu.get_tpu_info(), "vmem_capacity_bytes", cap))
    except Exception:
        pass
    if cap <= (64 << 20):            # v7x-class (64 MiB / TC) or unknown: conservative
        return 36 << 20, 48 << 20
    return 72 << 20, 96 << 20        # v5e / v6e: 128 MiB physical


def _choose_d_slab(d, hwp, budget, want_even_slabs=False):
    """Largest divisor of d (pref. multiple of 8, <=64) whose live VMEM fits."""
    def live_bytes(td):
        # double-buffered inputs (field 3*td, vol td, halos, edge) + out block
        # + ~18 live (td, hwp) f32 temporaries in the body.
        return hwp * 4 * (26 * td + 60)

    divs = [t for t in range(1, min(d, 64) + 1)
            if d % t == 0 and live_bytes(t) <= budget]
    if not divs:
        divs = [1]

    def pick(cands):
        mult8 = [t for t in cands if t % 8 == 0]
        return max(mult8) if mult8 else max(cands)

    if want_even_slabs:
        even = [t for t in divs if (d // t) >= 2 and (d // t) % 2 == 0]
        if even:
            return pick(even)
    return pick(divs)


# --------------------------------------------------------------------------
# Pallas kernel: adaptive elastic energy for one (batch, slab) tile
# --------------------------------------------------------------------------
def _adaptive_elasticity_kernel(f_ref, prv_ref, nxt_ref, vol_ref, edge_ref, out_ref, *,
                                lam, mu, kappa_l, kappa_m, base_w, grad_s,
                                td, spp, d_total, w_stride, hwp):
    p = pl.program_id(1)          # megacore split of the slab axis ("parallel")
    s = pl.program_id(2)          # slab within the split ("arbitrary", innermost)
    slab = p * spp + s

    edge = edge_ref[...]                      # (8, hwp) precomputed lane masks
    fac_w = edge[0:1, :]
    fac_h = edge[1:2, :]
    last_w = edge[2:3, :] > 0.0
    first_w = edge[3:4, :] > 0.0
    last_h = edge[4:5, :] > 0.0
    first_h = edge[5:6, :] > 0.0

    # One-sided (x1.0) vs central (x0.5) factor along D, as a (td, 1) column.
    d_glb = lax.broadcasted_iota(jnp.int32, (td, 1), 0) + slab * td
    fac_d = jnp.where((d_glb == 0) | (d_glb == d_total - 1),
                      jnp.float32(1.0), jnp.float32(0.5))

    prv = prv_ref[...].astype(jnp.float32)    # (3, hwp) halo plane below slab
    nxt = nxt_ref[...].astype(jnp.float32)    # (3, hwp) halo plane above slab
    vol = vol_ref[...].astype(jnp.float32)    # (td, hwp) batch-averaged volume

    # --- D-axis finite differences (halo planes give one-sided edges) -------
    if td == 1:
        def _grad_d(x, xp, xn):
            return (xn - xp) * fac_d
    elif td % 8 == 0:
        # Sublane rotate + edge select (no sublane-unaligned slice+concat copies).
        row = lax.broadcasted_iota(jnp.int32, (td, 1), 0)
        row_first = row == 0
        row_last = row == td - 1

        def _grad_d(x, xp, xn):
            fwd = jnp.where(row_last, xn, pltpu.roll(x, td - 1, 0))
            bwd = jnp.where(row_first, xp, pltpu.roll(x, 1, 0))
            return (fwd - bwd) * fac_d
    else:
        def _grad_d(x, xp, xn):
            fwd = jnp.concatenate([x[1:, :], xn], axis=0)
            bwd = jnp.concatenate([xp, x[:-1, :]], axis=0)
            return (fwd - bwd) * fac_d

    # --- H/W finite differences along the folded lane axis (XLU rolls) ------
    def _grad_lane(x, step, fac, is_last, is_first):
        fwd = pltpu.roll(x, hwp - step, 1)    # value at lane + step
        bwd = pltpu.roll(x, step, 1)          # value at lane - step
        fwd = jnp.where(is_last, x, fwd)      # one-sided at trailing edge
        bwd = jnp.where(is_first, x, bwd)     # one-sided at leading edge
        return (fwd - bwd) * fac

    def comp(c):
        x = f_ref[c].astype(jnp.float32)      # (td, hwp)
        return (_grad_d(x, prv[c:c + 1, :], nxt[c:c + 1, :]),      # d/dX
                _grad_lane(x, w_stride, fac_h, last_h, first_h),    # d/dY
                _grad_lane(x, 1, fac_w, last_w, first_w))           # d/dZ

    du_dx, du_dy, du_dz = comp(0)
    dv_dx, dv_dy, dv_dz = comp(1)
    dw_dx, dw_dy, dw_dz = comp(2)

    E_xx, E_yy, E_zz = du_dx, dv_dy, dw_dz
    E_xy = 0.5 * (du_dy + dv_dx)
    E_xz = 0.5 * (du_dz + dw_dx)
    E_yz = 0.5 * (dv_dz + dw_dy)

    trace_E = E_xx + E_yy + E_zz
    strain_sq = (E_xx * E_xx + E_yy * E_yy + E_zz * E_zz
                 + 2.0 * (E_xy * E_xy + E_xz * E_xz + E_yz * E_yz))
    deform_grad = jnp.sqrt(strain_sq)

    # vol factored out once; zero-padded vol lanes vanish automatically, so no
    # explicit `* valid` is needed.
    energy = (0.5 * (lam + kappa_l * deform_grad) * (trace_E * trace_E)
              + (mu + kappa_m * deform_grad) * strain_sq)
    weighted = vol * ((base_w + grad_s * deform_grad) * energy)    # (td, hwp)

    @pl.when(s == 0)
    def _init():
        out_ref[...] = jnp.zeros_like(out_ref)

    # Lane-aligned vector accumulation (VALU vreg adds; no XLU scalar reduce).
    if td % 8 == 0:
        partial = weighted[0:8, :]
        for g in range(1, td // 8):
            partial = partial + weighted[8 * g:8 * (g + 1), :]
        out_ref[...] += partial
    else:
        out_ref[0:1, :] += jnp.sum(weighted, axis=0, keepdims=True)


# --------------------------------------------------------------------------
# Per-scale wrapper: layout, halo gather, pallas_call
# --------------------------------------------------------------------------
def _adaptive_elasticity_scale_loss(field, vol_mean, *, lam, mu, kappa_l, kappa_m,
                                    base_w, grad_s):
    """field: (B, 3, D, H, W) ; vol_mean: (D, H, W) batch-averaged volume."""
    B, C, D, H, W = field.shape
    assert C == 3
    assert D >= 2 and H >= 2 and W >= 2, "torch.gradient needs >=2 samples per dim"
    HW = H * W
    HWp = _round_up(HW, 128)                  # lane-dense folded spatial axis

    budget, vmem_limit = _vmem_limits()
    TD = _choose_d_slab(D, HWp, budget, want_even_slabs=(B == 1))
    n_slab = D // TD
    # Megacore: with B == 1 split the slab axis into 2 parallel halves (v7x).
    P = 2 if (B == 1 and n_slab >= 2 and n_slab % 2 == 0) else 1
    spp = n_slab // P

    f = field.reshape(B, 3, D, HW)
    vm = vol_mean.reshape(D, HW)
    if HWp != HW:
        f = jnp.pad(f, ((0, 0), (0, 0), (0, 0), (0, HWp - HW)))
        vm = jnp.pad(vm, ((0, 0), (0, HWp - HW)))   # zero vol kills padded lanes

    # One halo plane per slab side (tiny gather outside the kernel).
    sl = np.arange(n_slab)
    prev_ids = np.maximum(sl * TD - 1, 0)
    next_ids = np.minimum(sl * TD + TD, D - 1)
    prv = jnp.transpose(f[:, :, prev_ids, :], (0, 2, 1, 3))     # (B, n_slab, 3, HWp)
    nxt = jnp.transpose(f[:, :, next_ids, :], (0, 2, 1, 3))

    if STREAM_BF16:
        f = f.astype(jnp.bfloat16)
        prv = prv.astype(jnp.bfloat16)
        nxt = nxt.astype(jnp.bfloat16)

    # Per-lane edge masks / factors (avoids vector integer div/mod in-kernel).
    lane = np.arange(HWp)
    w_idx, h_idx = lane % W, lane // W
    valid = lane < HW
    edge = np.zeros((8, HWp), np.float32)
    edge[0] = np.where((w_idx == 0) | (w_idx == W - 1), 1.0, 0.5) * valid
    edge[1] = np.where((h_idx == 0) | (h_idx == H - 1), 1.0, 0.5) * valid
    edge[2] = (w_idx == W - 1) & valid
    edge[3] = (w_idx == 0) & valid
    edge[4] = (h_idx == H - 1) & valid
    edge[5] = (h_idx == 0) & valid
    edge = jnp.asarray(edge)
    # TODO(synk): single-buffer `edge` via pipeline_mode=pl.Buffered(1) once
    # verified on the deployed jax version (frees 8*HWp*4 bytes of VMEM).

    kernel = functools.partial(
        _adaptive_elasticity_kernel,
        lam=float(lam), mu=float(mu), kappa_l=float(kappa_l), kappa_m=float(kappa_m),
        base_w=float(base_w), grad_s=float(grad_s),
        td=TD, spp=spp, d_total=D, w_stride=W, hwp=HWp)

    n_elem = B * D * HW
    elem_bytes = 2 if STREAM_BF16 else 4
    # NOTE: vm is re-streamed once per batch (index_map independent of b);
    # accepted — it is ~1/3 of the field bytes and only matters at large B.
    cost = pl.CostEstimate(
        flops=int(90 * n_elem),
        transcendentals=int(n_elem),
        bytes_accessed=int(elem_bytes * (f.size + prv.size + nxt.size)
                           + 4 * (B * vm.size + edge.size + B * P * 8 * HWp)))

    out = pl.pallas_call(
        kernel,
        out_shape=jax.ShapeDtypeStruct((B, P, 8, HWp), jnp.float32),
        grid_spec=pltpu.PrefetchScalarGridSpec(
            num_scalar_prefetch=0,
            grid=(B, P, spp),
            in_specs=[
                pl.BlockSpec((None, 3, TD, HWp), lambda b, p, s: (b, 0, p * spp + s, 0)),
                pl.BlockSpec((None, None, 3, HWp), lambda b, p, s: (b, p * spp + s, 0, 0)),
                pl.BlockSpec((None, None, 3, HWp), lambda b, p, s: (b, p * spp + s, 0, 0)),
                pl.BlockSpec((TD, HWp), lambda b, p, s: (p * spp + s, 0)),
                pl.BlockSpec((8, HWp), lambda b, p, s: (0, 0)),
            ],
            out_specs=pl.BlockSpec((None, None, 8, HWp), lambda b, p, s: (b, p, 0, 0)),
        ),
        compiler_params=pltpu.CompilerParams(
            dimension_semantics=("parallel", "parallel", "arbitrary"),
            vmem_limit_bytes=int(vmem_limit)),
        cost_estimate=cost,
    )(f, prv, nxt, vm, edge)

    return jnp.sum(out) / jnp.float32(B * D * H * W)


# --------------------------------------------------------------------------
# Trilinear downsample (align_corners=True): 2-tap gather + lerp per axis
# --------------------------------------------------------------------------
def _axis_linear_resize(x, axis, out_size):
    in_size = x.shape[axis]
    if out_size == in_size:
        return x
    if out_size == 1:
        return lax.slice_in_dim(x, 0, 1, axis=axis)
    pos = np.arange(out_size, dtype=np.float64) * (in_size - 1) / (out_size - 1)
    lo = np.minimum(np.floor(pos).astype(np.int64), in_size - 2)
    t = (pos - lo).astype(np.float32)
    x_lo = jnp.take(x, jnp.asarray(lo, dtype=jnp.int32), axis=axis)
    x_hi = jnp.take(x, jnp.asarray(lo + 1, dtype=jnp.int32), axis=axis)
    shape = [1] * x.ndim
    shape[axis] = out_size
    t = jnp.asarray(t).reshape(shape)
    return x_lo * (1.0 - t) + x_hi * t


def trilinear_downsample(x, scale):
    """F.interpolate(x, scale_factor=1/scale, mode='trilinear', align_corners=True)."""
    # TODO(synk): fuse this resize into the Pallas energy kernel per scale so
    # each scale does not re-read the full-resolution field from HBM (v5e win).
    _, _, D, H, W = x.shape
    sf = 1.0 / float(scale)
    x = _axis_linear_resize(x, 2, int(math.floor(D * sf)))
    x = _axis_linear_resize(x, 3, int(math.floor(H * sf)))
    x = _axis_linear_resize(x, 4, int(math.floor(W * sf)))
    return x


# --------------------------------------------------------------------------
# Full forward: LearnableAdaptiveElasticityLoss
# --------------------------------------------------------------------------
@functools.partial(jax.jit, static_argnames=(
    "num_scales", "lambda_lame", "mu_lame", "kappa_lambda", "kappa_mu",
    "base_weight", "gradient_scaling"))
def learnable_adaptive_elasticity_loss(deformation_field, volume, *, num_scales,
                                       lambda_lame, mu_lame, kappa_lambda, kappa_mu,
                                       base_weight, gradient_scaling):
    total = jnp.float32(0.0)
    for i in range(num_scales):
        scale = 2 ** i
        if scale == 1:
            df, vf = deformation_field, volume
        else:
            df = trilinear_downsample(deformation_field, scale)
            vf = trilinear_downsample(volume, scale)
        # Exact fold of the module's (B,1,XYZ) x (B,XYZ) -> (B,B,XYZ) broadcast.
        vol_mean = jnp.mean(vf[:, 0].astype(jnp.float32), axis=0)
        total = total + _adaptive_elasticity_scale_loss(
            df, vol_mean, lam=lambda_lame, mu=mu_lame, kappa_l=kappa_lambda,
            kappa_m=kappa_mu, base_w=base_weight, grad_s=gradient_scaling)
    return total


# --------------------------------------------------------------------------
# Literal numpy reference (mirrors the PyTorch forward, incl. broadcast)
# --------------------------------------------------------------------------
def _np_reference(deformation_field, volume, num_scales, lam, mu, kl, km, bw, gs):
    total = 0.0
    for i in range(num_scales):
        scale = 2 ** i
        dfm = deformation_field if scale == 1 else trilinear_downsample(deformation_field, scale)
        vol = volume if scale == 1 else trilinear_downsample(volume, scale)
        dfm = np.asarray(dfm, dtype=np.float64)
        vol = np.asarray(vol, dtype=np.float64)
        u, v, w = dfm[:, 0], dfm[:, 1], dfm[:, 2]
        g = np.gradient
        du_dx, du_dy, du_dz = g(u, axis=1), g(u, axis=2), g(u, axis=3)
        dv_dx, dv_dy, dv_dz = g(v, axis=1), g(v, axis=2), g(v, axis=3)
        dw_dx, dw_dy, dw_dz = g(w, axis=1), g(w, axis=2), g(w, axis=3)
        E_xx, E_yy, E_zz = du_dx, dv_dy, dw_dz
        E_xy = 0.5 * (du_dy + dv_dx)
        E_xz = 0.5 * (du_dz + dw_dx)
        E_yz = 0.5 * (dv_dz + dw_dy)
        trE = E_xx + E_yy + E_zz
        s2 = E_xx ** 2 + E_yy ** 2 + E_zz ** 2 + 2.0 * (E_xy ** 2 + E_xz ** 2 + E_yz ** 2)
        dg = np.sqrt(s2)
        ad_lam = (lam + kl * dg) * vol          # (B, B, X, Y, Z) cross-batch broadcast
        ad_mu = (mu + km * dg) * vol
        energy = 0.5 * ad_lam * trE ** 2 + ad_mu * s2
        weighted = (bw + gs * dg) * energy
        total += weighted.mean()
    return float(total)


if __name__ == "__main__":
    num_scales = 3
    lambda_init, mu_init = 1.0, 0.5
    kappa_lambda_init, kappa_mu_init = 0.1, 0.05
    base_weight, gradient_scaling = 1.0, 0.2

    key = jax.random.PRNGKey(0)
    k1, k2 = jax.random.split(key)
    deformation_field = jax.random.normal(k1, (2, 3, 16, 16, 16), dtype=jnp.float32)
    volume = jax.random.uniform(k2, (2, 1, 16, 16, 16), dtype=jnp.float32)

    loss = learnable_adaptive_elasticity_loss(
        deformation_field, volume,
        num_scales=num_scales, lambda_lame=lambda_init, mu_lame=mu_init,
        kappa_lambda=kappa_lambda_init, kappa_mu=kappa_mu_init,
        base_weight=base_weight, gradient_scaling=gradient_scaling)
    loss = jax.block_until_ready(loss)

    ref = _np_reference(deformation_field, volume, num_scales,
                        lambda_init, mu_init, kappa_lambda_init, kappa_mu_init,
                        base_weight, gradient_scaling)

    rel_err = abs(float(loss) - ref) / max(1.0, abs(ref))
    assert rel_err < 2e-3, (float(loss), ref, rel_err)
    print("KERNEL_OK")
</pallas_src>

<mosaic_0001>
module attributes {stable_mosaic.version = 11 : i64} {
  func.func @_adaptive_elasticity_kernel(%arg0: i32, %arg1: i32, %arg2: i32, %arg3: memref<1x3x16x256xf32, #tpu.memory_space<vmem>>, %arg4: memref<1x1x3x256xf32, #tpu.memory_space<vmem>>, %arg5: memref<1x1x3x256xf32, #tpu.memory_space<vmem>>, %arg6: memref<16x256xf32, #tpu.memory_space<vmem>>, %arg7: memref<8x256xf32, #tpu.memory_space<vmem>>, %arg8: memref<1x1x8x256xf32, #tpu.memory_space<vmem>>) attributes {dimension_semantics = [#tpu.dimension_semantics<parallel>, #tpu.dimension_semantics<parallel>, #tpu.dimension_semantics<arbitrary>], iteration_bounds = array<i64: 2, 1, 1>, scalar_prefetch = 0 : i64, scratch_operands = 0 : i64, tpu.core_type = #tpu.core_type<tc>, window_params = [{transform_indices = @transform_0, window_bounds = array<i64: 1, 3, 16, 256>}, {transform_indices = @transform_1, window_bounds = array<i64: 1, 1, 3, 256>}, {transform_indices = @transform_2, window_bounds = array<i64: 1, 1, 3, 256>}, {transform_indices = @transform_3, window_bounds = array<i64: 16, 256>}, {pipeline_mode = #tpu.pipeline_mode<synchronous>, transform_indices = @transform_4, window_bounds = array<i64: 8, 256>}, {transform_indices = @transform_5, window_bounds = array<i64: 1, 1, 8, 256>}]} {
    %c1_i32 = arith.constant 1 : i32
    %0 = arith.muli %arg1, %c1_i32 : i32
    %1 = arith.addi %0, %arg2 : i32
    %c0 = arith.constant 0 : index
    %c0_0 = arith.constant 0 : index
    %2 = vector.load %arg7[%c0, %c0_0] : memref<8x256xf32, #tpu.memory_space<vmem>>, vector<8x256xf32>
    %3 = vector.extract_strided_slice %2 {offsets = [0, 0], sizes = [1, 256], strides = [1, 1]} : vector<8x256xf32> to vector<1x256xf32>
    %4 = vector.extract_strided_slice %2 {offsets = [1, 0], sizes = [1, 256], strides = [1, 1]} : vector<8x256xf32> to vector<1x256xf32>
    %5 = vector.extract_strided_slice %2 {offsets = [2, 0], sizes = [1, 256], strides = [1, 1]} : vector<8x256xf32> to vector<1x256xf32>
    %cst = arith.constant 0.000000e+00 : f32
    %6 = vector.broadcast %cst : f32 to vector<1x256xf32>
    %7 = arith.cmpf ogt, %5, %6 : vector<1x256xf32>
    %8 = vector.extract_strided_slice %2 {offsets = [3, 0], sizes = [1, 256], strides = [1, 1]} : vector<8x256xf32> to vector<1x256xf32>
    %cst_1 = arith.constant 0.000000e+00 : f32
    %9 = vector.broadcast %cst_1 : f32 to vector<1x256xf32>
    %10 = arith.cmpf ogt, %8, %9 : vector<1x256xf32>
    %11 = vector.extract_strided_slice %2 {offsets = [4, 0], sizes = [1, 256], strides = [1, 1]} : vector<8x256xf32> to vector<1x256xf32>
    %cst_2 = arith.constant 0.000000e+00 : f32
    %12 = vector.broadcast %cst_2 : f32 to vector<1x256xf32>
    %13 = arith.cmpf ogt, %11, %12 : vector<1x256xf32>
    %14 = vector.extract_strided_slice %2 {offsets = [5, 0], sizes = [1, 256], strides = [1, 1]} : vector<8x256xf32> to vector<1x256xf32>
    %cst_3 = arith.constant 0.000000e+00 : f32
    %15 = vector.broadcast %cst_3 : f32 to vector<1x256xf32>
    %16 = arith.cmpf ogt, %14, %15 : vector<1x256xf32>
    %17 = tpu.iota {dimensions = array<i32: 0>} : vector<16x1xi32>
    %c16_i32 = arith.constant 16 : i32
    %18 = arith.muli %1, %c16_i32 : i32
    %19 = vector.broadcast %18 : i32 to vector<16x1xi32>
    %20 = arith.addi %17, %19 : vector<16x1xi32>
    %c0_i32 = arith.constant 0 : i32
    %21 = vector.broadcast %c0_i32 : i32 to vector<16x1xi32>
    %22 = arith.cmpi eq, %20, %21 : vector<16x1xi32>
    %c15_i32 = arith.constant 15 : i32
    %23 = vector.broadcast %c15_i32 : i32 to vector<16x1xi32>
    %24 = arith.cmpi eq, %20, %23 : vector<16x1xi32>
    %25 = arith.ori %22, %24 : vector<16x1xi1>
    %cst_4 = arith.constant 1.000000e+00 : f32
    %cst_5 = arith.constant 5.000000e-01 : f32
    %26 = vector.broadcast %cst_4 : f32 to vector<16x1xf32>
    %27 = vector.broadcast %cst_5 : f32 to vector<16x1xf32>
    %28 = arith.select %25, %26, %27 : vector<16x1xi1>, vector<16x1xf32>
    %c0_6 = arith.constant 0 : index
    %c0_7 = arith.constant 0 : index
    %c0_8 = arith.constant 0 : index
    %c0_9 = arith.constant 0 : index
    %29 = vector.load %arg4[%c0_6, %c0_7, %c0_8, %c0_9] : memref<1x1x3x256xf32, #tpu.memory_space<vmem>>, vector<1x1x3x256xf32>
    %30 = vector.shape_cast %29 : vector<1x1x3x256xf32> to vector<3x256xf32>
    %c0_10 = arith.constant 0 : index
    %c0_11 = arith.constant 0 : index
    %c0_12 = arith.constant 0 : index
    %c0_13 = arith.constant 0 : index
    %31 = vector.load %arg5[%c0_10, %c0_11, %c0_12, %c0_13] : memref<1x1x3x256xf32, #tpu.memory_space<vmem>>, vector<1x1x3x256xf32>
    %32 = vector.shape_cast %31 : vector<1x1x3x256xf32> to vector<3x256xf32>
    %c0_14 = arith.constant 0 : index
    %c0_15 = arith.constant 0 : index
    %33 = vector.load %arg6[%c0_14, %c0_15] : memref<16x256xf32, #tpu.memory_space<vmem>>, vector<16x256xf32>
    %34 = tpu.iota {dimensions = array<i32: 0>} : vector<16x1xi32>
    %c0_i32_16 = arith.constant 0 : i32
    %35 = vector.broadcast %c0_i32_16 : i32 to vector<16x1xi32>
    %36 = arith.cmpi eq, %34, %35 : vector<16x1xi32>
    %c15_i32_17 = arith.constant 15 : i32
    %37 = vector.broadcast %c15_i32_17 : i32 to vector<16x1xi32>
    %38 = arith.cmpi eq, %34, %37 : vector<16x1xi32>
    %c0_18 = arith.constant 0 : index
    %c0_19 = arith.constant 0 : index
    %c0_20 = arith.constant 0 : index
    %c0_21 = arith.constant 0 : index
    %39 = vector.load %arg3[%c0_18, %c0_19, %c0_20, %c0_21] : memref<1x3x16x256xf32, #tpu.memory_space<vmem>>, vector<1x1x16x256xf32>
    %40 = vector.shape_cast %39 : vector<1x1x16x256xf32> to vector<16x256xf32>
    %41 = vector.extract_strided_slice %30 {offsets = [0, 0], sizes = [1, 256], strides = [1, 1]} : vector<3x256xf32> to vector<1x256xf32>
    %42 = vector.extract_strided_slice %32 {offsets = [0, 0], sizes = [1, 256], strides = [1, 1]} : vector<3x256xf32> to vector<1x256xf32>
    %c15_i32_22 = arith.constant 15 : i32
    %43 = tpu.dynamic_rotate %40 by %c15_i32_22 dim 0 : vector<16x256xf32>, i32 -> vector<16x256xf32>
    %44 = vector.shape_cast %38 : vector<16x1xi1> to vector<16x1xi1>
    %45 = vector.broadcast %44 : vector<16x1xi1> to vector<16x256xi1>
    %46 = vector.shape_cast %42 : vector<1x256xf32> to vector<1x256xf32>
    %47 = vector.broadcast %46 : vector<1x256xf32> to vector<16x256xf32>
    %48 = arith.select %45, %47, %43 : vector<16x256xi1>, vector<16x256xf32>
    %c1_i32_23 = arith.constant 1 : i32
    %49 = tpu.dynamic_rotate %40 by %c1_i32_23 dim 0 : vector<16x256xf32>, i32 -> vector<16x256xf32>
    %50 = vector.shape_cast %36 : vector<16x1xi1> to vector<16x1xi1>
    %51 = vector.broadcast %50 : vector<16x1xi1> to vector<16x256xi1>
    %52 = vector.shape_cast %41 : vector<1x256xf32> to vector<1x256xf32>
    %53 = vector.broadcast %52 : vector<1x256xf32> to vector<16x256xf32>
    %54 = arith.select %51, %53, %49 : vector<16x256xi1>, vector<16x256xf32>
    %55 = arith.subf %48, %54 : vector<16x256xf32>
    %56 = vector.broadcast %28 : vector<16x1xf32> to vector<16x256xf32>
    %57 = arith.mulf %55, %56 : vector<16x256xf32>
    %c240_i32 = arith.constant 240 : i32
    %58 = tpu.dynamic_rotate %40 by %c240_i32 dim 1 : vector<16x256xf32>, i32 -> vector<16x256xf32>
    %c16_i32_24 = arith.constant 16 : i32
    %59 = tpu.dynamic_rotate %40 by %c16_i32_24 dim 1 : vector<16x256xf32>, i32 -> vector<16x256xf32>
    %60 = vector.shape_cast %13 : vector<1x256xi1> to vector<1x256xi1>
    %61 = vector.broadcast %60 : vector<1x256xi1> to vector<16x256xi1>
    %62 = arith.select %61, %40, %58 : vector<16x256xi1>, vector<16x256xf32>
    %63 = vector.shape_cast %16 : vector<1x256xi1> to vector<1x256xi1>
    %64 = vector.broadcast %63 : vector<1x256xi1> to vector<16x256xi1>
    %65 = arith.select %64, %40, %59 : vector<16x256xi1>, vector<16x256xf32>
    %66 = arith.subf %62, %65 : vector<16x256xf32>
    %67 = vector.broadcast %4 : vector<1x256xf32> to vector<16x256xf32>
    %68 = arith.mulf %66, %67 : vector<16x256xf32>
    %c255_i32 = arith.constant 255 : i32
    %69 = tpu.dynamic_rotate %40 by %c255_i32 dim 1 : vector<16x256xf32>, i32 -> vector<16x256xf32>
    %c1_i32_25 = arith.constant 1 : i32
    %70 = tpu.dynamic_rotate %40 by %c1_i32_25 dim 1 : vector<16x256xf32>, i32 -> vector<16x256xf32>
    %71 = vector.shape_cast %7 : vector<1x256xi1> to vector<1x256xi1>
    %72 = vector.broadcast %71 : vector<1x256xi1> to vector<16x256xi1>
    %73 = arith.select %72, %40, %69 : vector<16x256xi1>, vector<16x256xf32>
    %74 = vector.shape_cast %10 : vector<1x256xi1> to vector<1x256xi1>
    %75 = vector.broadcast %74 : vector<1x256xi1> to vector<16x256xi1>
    %76 = arith.select %75, %40, %70 : vector<16x256xi1>, vector<16x256xf32>
    %77 = arith.subf %73, %76 : vector<16x256xf32>
    %78 = vector.broadcast %3 : vector<1x256xf32> to vector<16x256xf32>
    %79 = arith.mulf %77, %78 : vector<16x256xf32>
    %c0_26 = arith.constant 0 : index
    %c1 = arith.constant 1 : index
    %c0_27 = arith.constant 0 : index
    %c0_28 = arith.constant 0 : index
    %80 = vector.load %arg3[%c0_26, %c1, %c0_27, %c0_28] : memref<1x3x16x256xf32, #tpu.memory_space<vmem>>, vector<1x1x16x256xf32>
    %81 = vector.shape_cast %80 : vector<1x1x16x256xf32> to vector<16x256xf32>
    %82 = vector.extract_strided_slice %30 {offsets = [1, 0], sizes = [1, 256], strides = [1, 1]} : vector<3x256xf32> to vector<1x256xf32>
    %83 = vector.extract_strided_slice %32 {offsets = [1, 0], sizes = [1, 256], strides = [1, 1]} : vector<3x256xf32> to vector<1x256xf32>
    %c15_i32_29 = arith.constant 15 : i32
    %84 = tpu.dynamic_rotate %81 by %c15_i32_29 dim 0 : vector<16x256xf32>, i32 -> vector<16x256xf32>
    %85 = vector.shape_cast %38 : vector<16x1xi1> to vector<16x1xi1>
    %86 = vector.broadcast %85 : vector<16x1xi1> to vector<16x256xi1>
    %87 = vector.shape_cast %83 : vector<1x256xf32> to vector<1x256xf32>
    %88 = vector.broadcast %87 : vector<1x256xf32> to vector<16x256xf32>
    %89 = arith.select %86, %88, %84 : vector<16x256xi1>, vector<16x256xf32>
    %c1_i32_30 = arith.constant 1 : i32
    %90 = tpu.dynamic_rotate %81 by %c1_i32_30 dim 0 : vector<16x256xf32>, i32 -> vector<16x256xf32>
    %91 = vector.shape_cast %36 : vector<16x1xi1> to vector<16x1xi1>
    %92 = vector.broadcast %91 : vector<16x1xi1> to vector<16x256xi1>
    %93 = vector.shape_cast %82 : vector<1x256xf32> to vector<1x256xf32>
    %94 = vector.broadcast %93 : vector<1x256xf32> to vector<16x256xf32>
    %95 = arith.select %92, %94, %90 : vector<16x256xi1>, vector<16x256xf32>
    %96 = arith.subf %89, %95 : vector<16x256xf32>
    %97 = vector.broadcast %28 : vector<16x1xf32> to vector<16x256xf32>
    %98 = arith.mulf %96, %97 : vector<16x256xf32>
    %c240_i32_31 = arith.constant 240 : i32
    %99 = tpu.dynamic_rotate %81 by %c240_i32_31 dim 1 : vector<16x256xf32>, i32 -> vector<16x256xf32>
    %c16_i32_32 = arith.constant 16 : i32
    %100 = tpu.dynamic_rotate %81 by %c16_i32_32 dim 1 : vector<16x256xf32>, i32 -> vector<16x256xf32>
    %101 = vector.shape_cast %13 : vector<1x256xi1> to vector<1x256xi1>
    %102 = vector.broadcast %101 : vector<1x256xi1> to vector<16x256xi1>
    %103 = arith.select %102, %81, %99 : vector<16x256xi1>, vector<16x256xf32>
    %104 = vector.shape_cast %16 : vector<1x256xi1> to vector<1x256xi1>
    %105 = vector.broadcast %104 : vector<1x256xi1> to vector<16x256xi1>
    %106 = arith.select %105, %81, %100 : vector<16x256xi1>, vector<16x256xf32>
    %107 = arith.subf %103, %106 : vector<16x256xf32>
    %108 = vector.broadcast %4 : vector<1x256xf32> to vector<16x256xf32>
    %109 = arith.mulf %107, %108 : vector<16x256xf32>
    %c255_i32_33 = arith.constant 255 : i32
    %110 = tpu.dynamic_rotate %81 by %c255_i32_33 dim 1 : vector<16x256xf32>, i32 -> vector<16x256xf32>
    %c1_i32_34 = arith.constant 1 : i32
    %111 = tpu.dynamic_rotate %81 by %c1_i32_34 dim 1 : vector<16x256xf32>, i32 -> vector<16x256xf32>
    %112 = vector.shape_cast %7 : vector<1x256xi1> to vector<1x256xi1>
    %113 = vector.broadcast %112 : vector<1x256xi1> to vector<16x256xi1>
    %114 = arith.select %113, %81, %110 : vector<16x256xi1>, vector<16x256xf32>
    %115 = vector.shape_cast %10 : vector<1x256xi1> to vector<1x256xi1>
    %116 = vector.broadcast %115 : vector<1x256xi1> to vector<16x256xi1>
    %117 = arith.select %116, %81, %111 : vector<16x256xi1>, vector<16x256xf32>
    %118 = arith.subf %114, %117 : vector<16x256xf32>
    %119 = vector.broadcast %3 : vector<1x256xf32> to vector<16x256xf32>
    %120 = arith.mulf %118, %119 : vector<16x256xf32>
    %c0_35 = arith.constant 0 : index
    %c2 = arith.constant 2 : index
    %c0_36 = arith.constant 0 : index
    %c0_37 = arith.constant 0 : index
    %121 = vector.load %arg3[%c0_35, %c2, %c0_36, %c0_37] : memref<1x3x16x256xf32, #tpu.memory_space<vmem>>, vector<1x1x16x256xf32>
    %122 = vector.shape_cast %121 : vector<1x1x16x256xf32> to vector<16x256xf32>
    %123 = vector.extract_strided_slice %30 {offsets = [2, 0], sizes = [1, 256], strides = [1, 1]} : vector<3x256xf32> to vector<1x256xf32>
    %124 = vector.extract_strided_slice %32 {offsets = [2, 0], sizes = [1, 256], strides = [1, 1]} : vector<3x256xf32> to vector<1x256xf32>
    %c15_i32_38 = arith.constant 15 : i32
    %125 = tpu.dynamic_rotate %122 by %c15_i32_38 dim 0 : vector<16x256xf32>, i32 -> vector<16x256xf32>
    %126 = vector.shape_cast %38 : vector<16x1xi1> to vector<16x1xi1>
    %127 = vector.broadcast %126 : vector<16x1xi1> to vector<16x256xi1>
    %128 = vector.shape_cast %124 : vector<1x256xf32> to vector<1x256xf32>
    %129 = vector.broadcast %128 : vector<1x256xf32> to vector<16x256xf32>
    %130 = arith.select %127, %129, %125 : vector<16x256xi1>, vector<16x256xf32>
    %c1_i32_39 = arith.constant 1 : i32
    %131 = tpu.dynamic_rotate %122 by %c1_i32_39 dim 0 : vector<16x256xf32>, i32 -> vector<16x256xf32>
    %132 = vector.shape_cast %36 : vector<16x1xi1> to vector<16x1xi1>
    %133 = vector.broadcast %132 : vector<16x1xi1> to vector<16x256xi1>
    %134 = vector.shape_cast %123 : vector<1x256xf32> to vector<1x256xf32>
    %135 = vector.broadcast %134 : vector<1x256xf32> to vector<16x256xf32>
    %136 = arith.select %133, %135, %131 : vector<16x256xi1>, vector<16x256xf32>
    %137 = arith.subf %130, %136 : vector<16x256xf32>
    %138 = vector.broadcast %28 : vector<16x1xf32> to vector<16x256xf32>
    %139 = arith.mulf %137, %138 : vector<16x256xf32>
    %c240_i32_40 = arith.constant 240 : i32
    %140 = tpu.dynamic_rotate %122 by %c240_i32_40 dim 1 : vector<16x256xf32>, i32 -> vector<16x256xf32>
    %c16_i32_41 = arith.constant 16 : i32
    %141 = tpu.dynamic_rotate %122 by %c16_i32_41 dim 1 : vector<16x256xf32>, i32 -> vector<16x256xf32>
    %142 = vector.shape_cast %13 : vector<1x256xi1> to vector<1x256xi1>
    %143 = vector.broadcast %142 : vector<1x256xi1> to vector<16x256xi1>
    %144 = arith.select %143, %122, %140 : vector<16x256xi1>, vector<16x256xf32>
    %145 = vector.shape_cast %16 : vector<1x256xi1> to vector<1x256xi1>
    %146 = vector.broadcast %145 : vector<1x256xi1> to vector<16x256xi1>
    %147 = arith.select %146, %122, %141 : vector<16x256xi1>, vector<16x256xf32>
    %148 = arith.subf %144, %147 : vector<16x256xf32>
    %149 = vector.broadcast %4 : vector<1x256xf32> to vector<16x256xf32>
    %150 = arith.mulf %148, %149 : vector<16x256xf32>
    %c255_i32_42 = arith.constant 255 : i32
    %151 = tpu.dynamic_rotate %122 by %c255_i32_42 dim 1 : vector<16x256xf32>, i32 -> vector<16x256xf32>
    %c1_i32_43 = arith.constant 1 : i32
    %152 = tpu.dynamic_rotate %122 by %c1_i32_43 dim 1 : vector<16x256xf32>, i32 -> vector<16x256xf32>
    %153 = vector.shape_cast %7 : vector<1x256xi1> to vector<1x256xi1>
    %154 = vector.broadcast %153 : vector<1x256xi1> to vector<16x256xi1>
    %155 = arith.select %154, %122, %151 : vector<16x256xi1>, vector<16x256xf32>
    %156 = vector.shape_cast %10 : vector<1x256xi1> to vector<1x256xi1>
    %157 = vector.broadcast %156 : vector<1x256xi1> to vector<16x256xi1>
    %158 = arith.select %157, %122, %152 : vector<16x256xi1>, vector<16x256xf32>
    %159 = arith.subf %155, %158 : vector<16x256xf32>
    %160 = vector.broadcast %3 : vector<1x256xf32> to vector<16x256xf32>
    %161 = arith.mulf %159, %160 : vector<16x256xf32>
    %162 = arith.addf %68, %98 : vector<16x256xf32>
    %cst_44 = arith.constant 5.000000e-01 : f32
    %163 = vector.broadcast %cst_44 : f32 to vector<16x256xf32>
    %164 = arith.mulf %163, %162 : vector<16x256xf32>
    %165 = arith.addf %79, %139 : vector<16x256xf32>
    %cst_45 = arith.constant 5.000000e-01 : f32
    %166 = vector.broadcast %cst_45 : f32 to vector<16x256xf32>
    %167 = arith.mulf %166, %165 : vector<16x256xf32>
    %168 = arith.addf %120, %150 : vector<16x256xf32>
    %cst_46 = arith.constant 5.000000e-01 : f32
    %169 = vector.broadcast %cst_46 : f32 to vector<16x256xf32>
    %170 = arith.mulf %169, %168 : vector<16x256xf32>
    %171 = arith.addf %57, %109 : vector<16x256xf32>
    %172 = arith.addf %171, %161 : vector<16x256xf32>
    %173 = arith.mulf %57, %57 : vector<16x256xf32>
    %174 = arith.mulf %109, %109 : vector<16x256xf32>
    %175 = arith.addf %173, %174 : vector<16x256xf32>
    %176 = arith.mulf %161, %161 : vector<16x256xf32>
    %177 = arith.addf %175, %176 : vector<16x256xf32>
    %178 = arith.mulf %164, %164 : vector<16x256xf32>
    %179 = arith.mulf %167, %167 : vector<16x256xf32>
    %180 = arith.addf %178, %179 : vector<16x256xf32>
    %181 = arith.mulf %170, %170 : vector<16x256xf32>
    %182 = arith.addf %180, %181 : vector<16x256xf32>
    %cst_47 = arith.constant 2.000000e+00 : f32
    %183 = vector.broadcast %cst_47 : f32 to vector<16x256xf32>
    %184 = arith.mulf %183, %182 : vector<16x256xf32>
    %185 = arith.addf %177, %184 : vector<16x256xf32>
    %186 = math.sqrt %185 : vector<16x256xf32>
    %cst_48 = arith.constant 1.000000e-01 : f32
    %187 = vector.broadcast %cst_48 : f32 to vector<16x256xf32>
    %188 = arith.mulf %187, %186 : vector<16x256xf32>
    %cst_49 = arith.constant 1.000000e+00 : f32
    %189 = vector.broadcast %cst_49 : f32 to vector<16x256xf32>
    %190 = arith.addf %189, %188 : vector<16x256xf32>
    %cst_50 = arith.constant 5.000000e-01 : f32
    %191 = vector.broadcast %cst_50 : f32 to vector<16x256xf32>
    %192 = arith.mulf %191, %190 : vector<16x256xf32>
    %193 = arith.mulf %172, %172 : vector<16x256xf32>
    %194 = arith.mulf %192, %193 : vector<16x256xf32>
    %cst_51 = arith.constant 5.000000e-02 : f32
    %195 = vector.broadcast %cst_51 : f32 to vector<16x256xf32>
    %196 = arith.mulf %195, %186 : vector<16x256xf32>
    %cst_52 = arith.constant 5.000000e-01 : f32
    %197 = vector.broadcast %cst_52 : f32 to vector<16x256xf32>
    %198 = arith.addf %197, %196 : vector<16x256xf32>
    %199 = arith.mulf %198, %185 : vector<16x256xf32>
    %200 = arith.addf %194, %199 : vector<16x256xf32>
    %cst_53 = arith.constant 2.000000e-01 : f32
    %201 = vector.broadcast %cst_53 : f32 to vector<16x256xf32>
    %202 = arith.mulf %201, %186 : vector<16x256xf32>
    %cst_54 = arith.constant 1.000000e+00 : f32
    %203 = vector.broadcast %cst_54 : f32 to vector<16x256xf32>
    %204 = arith.addf %203, %202 : vector<16x256xf32>
    %205 = arith.mulf %204, %200 : vector<16x256xf32>
    %206 = arith.mulf %33, %205 : vector<16x256xf32>
    %c0_i32_55 = arith.constant 0 : i32
    %207 = arith.cmpi eq, %arg2, %c0_i32_55 : i32
    %208 = arith.extui %207 : i1 to i32
    %c0_i32_56 = arith.constant 0 : i32
    %209 = arith.cmpi ne, %208, %c0_i32_56 : i32
    scf.if %209 {
      %cst_65 = arith.constant 0.000000e+00 : f32
      %219 = vector.broadcast %cst_65 : f32 to vector<8x256xf32>
      %c0_66 = arith.constant 0 : index
      %c0_67 = arith.constant 0 : index
      %c0_68 = arith.constant 0 : index
      %c0_69 = arith.constant 0 : index
      %220 = vector.load %arg8[%c0_66, %c0_67, %c0_68, %c0_69] : memref<1x1x8x256xf32, #tpu.memory_space<vmem>>, vector<1x1x8x256xf32>
      %221 = vector.shape_cast %220 : vector<1x1x8x256xf32> to vector<8x256xf32>
      %222 = vector.shape_cast %219 : vector<8x256xf32> to vector<1x1x8x256xf32>
      tpu.vector_store %arg8[%c0_66, %c0_67, %c0_68, %c0_69], %222 {strides = array<i32>} : memref<1x1x8x256xf32, #tpu.memory_space<vmem>>, vector<1x1x8x256xf32>,
    } else {
    }
    %210 = vector.extract_strided_slice %206 {offsets = [0, 0], sizes = [8, 256], strides = [1, 1]} : vector<16x256xf32> to vector<8x256xf32>
    %211 = vector.extract_strided_slice %206 {offsets = [8, 0], sizes = [8, 256], strides = [1, 1]} : vector<16x256xf32> to vector<8x256xf32>
    %212 = arith.addf %210, %211 : vector<8x256xf32>
    %c0_57 = arith.constant 0 : index
    %c0_58 = arith.constant 0 : index
    %c0_59 = arith.constant 0 : index
    %c0_60 = arith.constant 0 : index
    %213 = vector.load %arg8[%c0_57, %c0_58, %c0_59, %c0_60] : memref<1x1x8x256xf32, #tpu.memory_space<vmem>>, vector<1x1x8x256xf32>
    %214 = vector.shape_cast %213 : vector<1x1x8x256xf32> to vector<8x256xf32>
    %215 = arith.addf %214, %212 : vector<8x256xf32>
    %c0_61 = arith.constant 0 : index
    %c0_62 = arith.constant 0 : index
    %c0_63 = arith.constant 0 : index
    %c0_64 = arith.constant 0 : index
    %216 = vector.load %arg8[%c0_61, %c0_62, %c0_63, %c0_64] : memref<1x1x8x256xf32, #tpu.memory_space<vmem>>, vector<1x1x8x256xf32>
    %217 = vector.shape_cast %216 : vector<1x1x8x256xf32> to vector<8x256xf32>
    %218 = vector.shape_cast %215 : vector<8x256xf32> to vector<1x1x8x256xf32>
    tpu.vector_store %arg8[%c0_61, %c0_62, %c0_63, %c0_64], %218 {strides = array<i32>} : memref<1x1x8x256xf32, #tpu.memory_space<vmem>>, vector<1x1x8x256xf32>,
    return
  }
  func.func @transform_0(%arg0: i32, %arg1: i32, %arg2: i32) -> (i32, i32, i32, i32) {
    %c1_i32 = arith.constant 1 : i32
    %0 = arith.muli %arg1, %c1_i32 : i32
    %1 = arith.addi %0, %arg2 : i32
    %c0_i32 = arith.constant 0 : i32
    %c0_i32_0 = arith.constant 0 : i32
    %c0_i32_1 = arith.constant 0 : i32
    return %arg0, %c0_i32, %1, %c0_i32_0 : i32, i32, i32, i32
  }
  func.func @transform_1(%arg0: i32, %arg1: i32, %arg2: i32) -> (i32, i32, i32, i32) {
    %c1_i32 = arith.constant 1 : i32
    %0 = arith.muli %arg1, %c1_i32 : i32
    %1 = arith.addi %0, %arg2 : i32
    %c0_i32 = arith.constant 0 : i32
    %c0_i32_0 = arith.constant 0 : i32
    %c0_i32_1 = arith.constant 0 : i32
    return %arg0, %1, %c0_i32, %c0_i32_0 : i32, i32, i32, i32
  }
  func.func @transform_2(%arg0: i32, %arg1: i32, %arg2: i32) -> (i32, i32, i32, i32) {
    %c1_i32 = arith.constant 1 : i32
    %0 = arith.muli %arg1, %c1_i32 : i32
    %1 = arith.addi %0, %arg2 : i32
    %c0_i32 = arith.constant 0 : i32
    %c0_i32_0 = arith.constant 0 : i32
    %c0_i32_1 = arith.constant 0 : i32
    return %arg0, %1, %c0_i32, %c0_i32_0 : i32, i32, i32, i32
  }
  func.func @transform_3(%arg0: i32, %arg1: i32, %arg2: i32) -> (i32, i32) {
    %c1_i32 = arith.constant 1 : i32
    %0 = arith.muli %arg1, %c1_i32 : i32
    %1 = arith.addi %0, %arg2 : i32
    %c0_i32 = arith.constant 0 : i32
    %c0_i32_0 = arith.constant 0 : i32
    return %1, %c0_i32 : i32, i32
  }
  func.func @transform_4(%arg0: i32, %arg1: i32, %arg2: i32) -> (i32, i32) {
    %c0_i32 = arith.constant 0 : i32
    %c0_i32_0 = arith.constant 0 : i32
    %c0_i32_1 = arith.constant 0 : i32
    return %c0_i32, %c0_i32_0 : i32, i32
  }
  func.func @transform_5(%arg0: i32, %arg1: i32, %arg2: i32) -> (i32, i32, i32, i32) {
    %c0_i32 = arith.constant 0 : i32
    %c0_i32_0 = arith.constant 0 : i32
    %c0_i32_1 = arith.constant 0 : i32
    return %arg0, %arg1, %c0_i32, %c0_i32_0 : i32, i32, i32, i32
  }
}

module attributes {stable_mosaic.version = 11 : i64} {
  func.func @_adaptive_elasticity_kernel(%arg0: i32, %arg1: i32, %arg2: i32, %arg3: memref<1x3x8x128xf32, #tpu.memory_space<vmem>>, %arg4: memref<1x1x3x128xf32, #tpu.memory_space<vmem>>, %arg5: memref<1x1x3x128xf32, #tpu.memory_space<vmem>>, %arg6: memref<8x128xf32, #tpu.memory_space<vmem>>, %arg7: memref<8x128xf32, #tpu.memory_space<vmem>>, %arg8: memref<1x1x8x128xf32, #tpu.memory_space<vmem>>) attributes {dimension_semantics = [#tpu.dimension_semantics<parallel>, #tpu.dimension_semantics<parallel>, #tpu.dimension_semantics<arbitrary>], iteration_bounds = array<i64: 2, 1, 1>, scalar_prefetch = 0 : i64, scratch_operands = 0 : i64, tpu.core_type = #tpu.core_type<tc>, window_params = [{transform_indices = @transform_0, window_bounds = array<i64: 1, 3, 8, 128>}, {transform_indices = @transform_1, window_bounds = array<i64: 1, 1, 3, 128>}, {transform_indices = @transform_2, window_bounds = array<i64: 1, 1, 3, 128>}, {transform_indices = @transform_3, window_bounds = array<i64: 8, 128>}, {pipeline_mode = #tpu.pipeline_mode<synchronous>, transform_indices = @transform_4, window_bounds = array<i64: 8, 128>}, {transform_indices = @transform_5, window_bounds = array<i64: 1, 1, 8, 128>}]} {
    %c1_i32 = arith.constant 1 : i32
    %0 = arith.muli %arg1, %c1_i32 : i32
    %1 = arith.addi %0, %arg2 : i32
    %c0 = arith.constant 0 : index
    %c0_0 = arith.constant 0 : index
    %2 = vector.load %arg7[%c0, %c0_0] : memref<8x128xf32, #tpu.memory_space<vmem>>, vector<8x128xf32>
    %3 = vector.extract_strided_slice %2 {offsets = [0, 0], sizes = [1, 128], strides = [1, 1]} : vector<8x128xf32> to vector<1x128xf32>
    %4 = vector.extract_strided_slice %2 {offsets = [1, 0], sizes = [1, 128], strides = [1, 1]} : vector<8x128xf32> to vector<1x128xf32>
    %5 = vector.extract_strided_slice %2 {offsets = [2, 0], sizes = [1, 128], strides = [1, 1]} : vector<8x128xf32> to vector<1x128xf32>
    %cst = arith.constant 0.000000e+00 : f32
    %6 = vector.broadcast %cst : f32 to vector<1x128xf32>
    %7 = arith.cmpf ogt, %5, %6 : vector<1x128xf32>
    %8 = vector.extract_strided_slice %2 {offsets = [3, 0], sizes = [1, 128], strides = [1, 1]} : vector<8x128xf32> to vector<1x128xf32>
    %cst_1 = arith.constant 0.000000e+00 : f32
    %9 = vector.broadcast %cst_1 : f32 to vector<1x128xf32>
    %10 = arith.cmpf ogt, %8, %9 : vector<1x128xf32>
    %11 = vector.extract_strided_slice %2 {offsets = [4, 0], sizes = [1, 128], strides = [1, 1]} : vector<8x128xf32> to vector<1x128xf32>
    %cst_2 = arith.constant 0.000000e+00 : f32
    %12 = vector.broadcast %cst_2 : f32 to vector<1x128xf32>
    %13 = arith.cmpf ogt, %11, %12 : vector<1x128xf32>
    %14 = vector.extract_strided_slice %2 {offsets = [5, 0], sizes = [1, 128], strides = [1, 1]} : vector<8x128xf32> to vector<1x128xf32>
    %cst_3 = arith.constant 0.000000e+00 : f32
    %15 = vector.broadcast %cst_3 : f32 to vector<1x128xf32>
    %16 = arith.cmpf ogt, %14, %15 : vector<1x128xf32>
    %17 = tpu.iota {dimensions = array<i32: 0>} : vector<8x1xi32>
    %c8_i32 = arith.constant 8 : i32
    %18 = arith.muli %1, %c8_i32 : i32
    %19 = vector.broadcast %18 : i32 to vector<8x1xi32>
    %20 = arith.addi %17, %19 : vector<8x1xi32>
    %c0_i32 = arith.constant 0 : i32
    %21 = vector.broadcast %c0_i32 : i32 to vector<8x1xi32>
    %22 = arith.cmpi eq, %20, %21 : vector<8x1xi32>
    %c7_i32 = arith.constant 7 : i32
    %23 = vector.broadcast %c7_i32 : i32 to vector<8x1xi32>
    %24 = arith.cmpi eq, %20, %23 : vector<8x1xi32>
    %25 = arith.ori %22, %24 : vector<8x1xi1>
    %cst_4 = arith.constant 1.000000e+00 : f32
    %cst_5 = arith.constant 5.000000e-01 : f32
    %26 = vector.broadcast %cst_4 : f32 to vector<8x1xf32>
    %27 = vector.broadcast %cst_5 : f32 to vector<8x1xf32>
    %28 = arith.select %25, %26, %27 : vector<8x1xi1>, vector<8x1xf32>
    %c0_6 = arith.constant 0 : index
    %c0_7 = arith.constant 0 : index
    %c0_8 = arith.constant 0 : index
    %c0_9 = arith.constant 0 : index
    %29 = vector.load %arg4[%c0_6, %c0_7, %c0_8, %c0_9] : memref<1x1x3x128xf32, #tpu.memory_space<vmem>>, vector<1x1x3x128xf32>
    %30 = vector.shape_cast %29 : vector<1x1x3x128xf32> to vector<3x128xf32>
    %c0_10 = arith.constant 0 : index
    %c0_11 = arith.constant 0 : index
    %c0_12 = arith.constant 0 : index
    %c0_13 = arith.constant 0 : index
    %31 = vector.load %arg5[%c0_10, %c0_11, %c0_12, %c0_13] : memref<1x1x3x128xf32, #tpu.memory_space<vmem>>, vector<1x1x3x128xf32>
    %32 = vector.shape_cast %31 : vector<1x1x3x128xf32> to vector<3x128xf32>
    %c0_14 = arith.constant 0 : index
    %c0_15 = arith.constant 0 : index
    %33 = vector.load %arg6[%c0_14, %c0_15] : memref<8x128xf32, #tpu.memory_space<vmem>>, vector<8x128xf32>
    %34 = tpu.iota {dimensions = array<i32: 0>} : vector<8x1xi32>
    %c0_i32_16 = arith.constant 0 : i32
    %35 = vector.broadcast %c0_i32_16 : i32 to vector<8x1xi32>
    %36 = arith.cmpi eq, %34, %35 : vector<8x1xi32>
    %c7_i32_17 = arith.constant 7 : i32
    %37 = vector.broadcast %c7_i32_17 : i32 to vector<8x1xi32>
    %38 = arith.cmpi eq, %34, %37 : vector<8x1xi32>
    %c0_18 = arith.constant 0 : index
    %c0_19 = arith.constant 0 : index
    %c0_20 = arith.constant 0 : index
    %c0_21 = arith.constant 0 : index
    %39 = vector.load %arg3[%c0_18, %c0_19, %c0_20, %c0_21] : memref<1x3x8x128xf32, #tpu.memory_space<vmem>>, vector<1x1x8x128xf32>
    %40 = vector.shape_cast %39 : vector<1x1x8x128xf32> to vector<8x128xf32>
    %41 = vector.extract_strided_slice %30 {offsets = [0, 0], sizes = [1, 128], strides = [1, 1]} : vector<3x128xf32> to vector<1x128xf32>
    %42 = vector.extract_strided_slice %32 {offsets = [0, 0], sizes = [1, 128], strides = [1, 1]} : vector<3x128xf32> to vector<1x128xf32>
    %c7_i32_22 = arith.constant 7 : i32
    %43 = tpu.dynamic_rotate %40 by %c7_i32_22 dim 0 : vector<8x128xf32>, i32 -> vector<8x128xf32>
    %44 = vector.shape_cast %38 : vector<8x1xi1> to vector<8x1xi1>
    %45 = vector.broadcast %44 : vector<8x1xi1> to vector<8x128xi1>
    %46 = vector.shape_cast %42 : vector<1x128xf32> to vector<1x128xf32>
    %47 = vector.broadcast %46 : vector<1x128xf32> to vector<8x128xf32>
    %48 = arith.select %45, %47, %43 : vector<8x128xi1>, vector<8x128xf32>
    %c1_i32_23 = arith.constant 1 : i32
    %49 = tpu.dynamic_rotate %40 by %c1_i32_23 dim 0 : vector<8x128xf32>, i32 -> vector<8x128xf32>
    %50 = vector.shape_cast %36 : vector<8x1xi1> to vector<8x1xi1>
    %51 = vector.broadcast %50 : vector<8x1xi1> to vector<8x128xi1>
    %52 = vector.shape_cast %41 : vector<1x128xf32> to vector<1x128xf32>
    %53 = vector.broadcast %52 : vector<1x128xf32> to vector<8x128xf32>
    %54 = arith.select %51, %53, %49 : vector<8x128xi1>, vector<8x128xf32>
    %55 = arith.subf %48, %54 : vector<8x128xf32>
    %56 = vector.broadcast %28 : vector<8x1xf32> to vector<8x128xf32>
    %57 = arith.mulf %55, %56 : vector<8x128xf32>
    %c120_i32 = arith.constant 120 : i32
    %58 = tpu.dynamic_rotate %40 by %c120_i32 dim 1 : vector<8x128xf32>, i32 -> vector<8x128xf32>
    %c8_i32_24 = arith.constant 8 : i32
    %59 = tpu.dynamic_rotate %40 by %c8_i32_24 dim 1 : vector<8x128xf32>, i32 -> vector<8x128xf32>
    %60 = vector.shape_cast %13 : vector<1x128xi1> to vector<1x128xi1>
    %61 = vector.broadcast %60 : vector<1x128xi1> to vector<8x128xi1>
    %62 = arith.select %61, %40, %58 : vector<8x128xi1>, vector<8x128xf32>
    %63 = vector.shape_cast %16 : vector<1x128xi1> to vector<1x128xi1>
    %64 = vector.broadcast %63 : vector<1x128xi1> to vector<8x128xi1>
    %65 = arith.select %64, %40, %59 : vector<8x128xi1>, vector<8x128xf32>
    %66 = arith.subf %62, %65 : vector<8x128xf32>
    %67 = vector.broadcast %4 : vector<1x128xf32> to vector<8x128xf32>
    %68 = arith.mulf %66, %67 : vector<8x128xf32>
    %c127_i32 = arith.constant 127 : i32
    %69 = tpu.dynamic_rotate %40 by %c127_i32 dim 1 : vector<8x128xf32>, i32 -> vector<8x128xf32>
    %c1_i32_25 = arith.constant 1 : i32
    %70 = tpu.dynamic_rotate %40 by %c1_i32_25 dim 1 : vector<8x128xf32>, i32 -> vector<8x128xf32>
    %71 = vector.shape_cast %7 : vector<1x128xi1> to vector<1x128xi1>
    %72 = vector.broadcast %71 : vector<1x128xi1> to vector<8x128xi1>
    %73 = arith.select %72, %40, %69 : vector<8x128xi1>, vector<8x128xf32>
    %74 = vector.shape_cast %10 : vector<1x128xi1> to vector<1x128xi1>
    %75 = vector.broadcast %74 : vector<1x128xi1> to vector<8x128xi1>
    %76 = arith.select %75, %40, %70 : vector<8x128xi1>, vector<8x128xf32>
    %77 = arith.subf %73, %76 : vector<8x128xf32>
    %78 = vector.broadcast %3 : vector<1x128xf32> to vector<8x128xf32>
    %79 = arith.mulf %77, %78 : vector<8x128xf32>
    %c0_26 = arith.constant 0 : index
    %c1 = arith.constant 1 : index
    %c0_27 = arith.constant 0 : index
    %c0_28 = arith.constant 0 : index
    %80 = vector.load %arg3[%c0_26, %c1, %c0_27, %c0_28] : memref<1x3x8x128xf32, #tpu.memory_space<vmem>>, vector<1x1x8x128xf32>
    %81 = vector.shape_cast %80 : vector<1x1x8x128xf32> to vector<8x128xf32>
    %82 = vector.extract_strided_slice %30 {offsets = [1, 0], sizes = [1, 128], strides = [1, 1]} : vector<3x128xf32> to vector<1x128xf32>
    %83 = vector.extract_strided_slice %32 {offsets = [1, 0], sizes = [1, 128], strides = [1, 1]} : vector<3x128xf32> to vector<1x128xf32>
    %c7_i32_29 = arith.constant 7 : i32
    %84 = tpu.dynamic_rotate %81 by %c7_i32_29 dim 0 : vector<8x128xf32>, i32 -> vector<8x128xf32>
    %85 = vector.shape_cast %38 : vector<8x1xi1> to vector<8x1xi1>
    %86 = vector.broadcast %85 : vector<8x1xi1> to vector<8x128xi1>
    %87 = vector.shape_cast %83 : vector<1x128xf32> to vector<1x128xf32>
    %88 = vector.broadcast %87 : vector<1x128xf32> to vector<8x128xf32>
    %89 = arith.select %86, %88, %84 : vector<8x128xi1>, vector<8x128xf32>
    %c1_i32_30 = arith.constant 1 : i32
    %90 = tpu.dynamic_rotate %81 by %c1_i32_30 dim 0 : vector<8x128xf32>, i32 -> vector<8x128xf32>
    %91 = vector.shape_cast %36 : vector<8x1xi1> to vector<8x1xi1>
    %92 = vector.broadcast %91 : vector<8x1xi1> to vector<8x128xi1>
    %93 = vector.shape_cast %82 : vector<1x128xf32> to vector<1x128xf32>
    %94 = vector.broadcast %93 : vector<1x128xf32> to vector<8x128xf32>
    %95 = arith.select %92, %94, %90 : vector<8x128xi1>, vector<8x128xf32>
    %96 = arith.subf %89, %95 : vector<8x128xf32>
    %97 = vector.broadcast %28 : vector<8x1xf32> to vector<8x128xf32>
    %98 = arith.mulf %96, %97 : vector<8x128xf32>
    %c120_i32_31 = arith.constant 120 : i32
    %99 = tpu.dynamic_rotate %81 by %c120_i32_31 dim 1 : vector<8x128xf32>, i32 -> vector<8x128xf32>
    %c8_i32_32 = arith.constant 8 : i32
    %100 = tpu.dynamic_rotate %81 by %c8_i32_32 dim 1 : vector<8x128xf32>, i32 -> vector<8x128xf32>
    %101 = vector.shape_cast %13 : vector<1x128xi1> to vector<1x128xi1>
    %102 = vector.broadcast %101 : vector<1x128xi1> to vector<8x128xi1>
    %103 = arith.select %102, %81, %99 : vector<8x128xi1>, vector<8x128xf32>
    %104 = vector.shape_cast %16 : vector<1x128xi1> to vector<1x128xi1>
    %105 = vector.broadcast %104 : vector<1x128xi1> to vector<8x128xi1>
    %106 = arith.select %105, %81, %100 : vector<8x128xi1>, vector<8x128xf32>
    %107 = arith.subf %103, %106 : vector<8x128xf32>
    %108 = vector.broadcast %4 : vector<1x128xf32> to vector<8x128xf32>
    %109 = arith.mulf %107, %108 : vector<8x128xf32>
    %c127_i32_33 = arith.constant 127 : i32
    %110 = tpu.dynamic_rotate %81 by %c127_i32_33 dim 1 : vector<8x128xf32>, i32 -> vector<8x128xf32>
    %c1_i32_34 = arith.constant 1 : i32
    %111 = tpu.dynamic_rotate %81 by %c1_i32_34 dim 1 : vector<8x128xf32>, i32 -> vector<8x128xf32>
    %112 = vector.shape_cast %7 : vector<1x128xi1> to vector<1x128xi1>
    %113 = vector.broadcast %112 : vector<1x128xi1> to vector<8x128xi1>
    %114 = arith.select %113, %81, %110 : vector<8x128xi1>, vector<8x128xf32>
    %115 = vector.shape_cast %10 : vector<1x128xi1> to vector<1x128xi1>
    %116 = vector.broadcast %115 : vector<1x128xi1> to vector<8x128xi1>
    %117 = arith.select %116, %81, %111 : vector<8x128xi1>, vector<8x128xf32>
    %118 = arith.subf %114, %117 : vector<8x128xf32>
    %119 = vector.broadcast %3 : vector<1x128xf32> to vector<8x128xf32>
    %120 = arith.mulf %118, %119 : vector<8x128xf32>
    %c0_35 = arith.constant 0 : index
    %c2 = arith.constant 2 : index
    %c0_36 = arith.constant 0 : index
    %c0_37 = arith.constant 0 : index
    %121 = vector.load %arg3[%c0_35, %c2, %c0_36, %c0_37] : memref<1x3x8x128xf32, #tpu.memory_space<vmem>>, vector<1x1x8x128xf32>
    %122 = vector.shape_cast %121 : vector<1x1x8x128xf32> to vector<8x128xf32>
    %123 = vector.extract_strided_slice %30 {offsets = [2, 0], sizes = [1, 128], strides = [1, 1]} : vector<3x128xf32> to vector<1x128xf32>
    %124 = vector.extract_strided_slice %32 {offsets = [2, 0], sizes = [1, 128], strides = [1, 1]} : vector<3x128xf32> to vector<1x128xf32>
    %c7_i32_38 = arith.constant 7 : i32
    %125 = tpu.dynamic_rotate %122 by %c7_i32_38 dim 0 : vector<8x128xf32>, i32 -> vector<8x128xf32>
    %126 = vector.shape_cast %38 : vector<8x1xi1> to vector<8x1xi1>
    %127 = vector.broadcast %126 : vector<8x1xi1> to vector<8x128xi1>
    %128 = vector.shape_cast %124 : vector<1x128xf32> to vector<1x128xf32>
    %129 = vector.broadcast %128 : vector<1x128xf32> to vector<8x128xf32>
    %130 = arith.select %127, %129, %125 : vector<8x128xi1>, vector<8x128xf32>
    %c1_i32_39 = arith.constant 1 : i32
    %131 = tpu.dynamic_rotate %122 by %c1_i32_39 dim 0 : vector<8x128xf32>, i32 -> vector<8x128xf32>
    %132 = vector.shape_cast %36 : vector<8x1xi1> to vector<8x1xi1>
    %133 = vector.broadcast %132 : vector<8x1xi1> to vector<8x128xi1>
    %134 = vector.shape_cast %123 : vector<1x128xf32> to vector<1x128xf32>
    %135 = vector.broadcast %134 : vector<1x128xf32> to vector<8x128xf32>
    %136 = arith.select %133, %135, %131 : vector<8x128xi1>, vector<8x128xf32>
    %137 = arith.subf %130, %136 : vector<8x128xf32>
    %138 = vector.broadcast %28 : vector<8x1xf32> to vector<8x128xf32>
    %139 = arith.mulf %137, %138 : vector<8x128xf32>
    %c120_i32_40 = arith.constant 120 : i32
    %140 = tpu.dynamic_rotate %122 by %c120_i32_40 dim 1 : vector<8x128xf32>, i32 -> vector<8x128xf32>
    %c8_i32_41 = arith.constant 8 : i32
    %141 = tpu.dynamic_rotate %122 by %c8_i32_41 dim 1 : vector<8x128xf32>, i32 -> vector<8x128xf32>
    %142 = vector.shape_cast %13 : vector<1x128xi1> to vector<1x128xi1>
    %143 = vector.broadcast %142 : vector<1x128xi1> to vector<8x128xi1>
    %144 = arith.select %143, %122, %140 : vector<8x128xi1>, vector<8x128xf32>
    %145 = vector.shape_cast %16 : vector<1x128xi1> to vector<1x128xi1>
    %146 = vector.broadcast %145 : vector<1x128xi1> to vector<8x128xi1>
    %147 = arith.select %146, %122, %141 : vector<8x128xi1>, vector<8x128xf32>
    %148 = arith.subf %144, %147 : vector<8x128xf32>
    %149 = vector.broadcast %4 : vector<1x128xf32> to vector<8x128xf32>
    %150 = arith.mulf %148, %149 : vector<8x128xf32>
    %c127_i32_42 = arith.constant 127 : i32
    %151 = tpu.dynamic_rotate %122 by %c127_i32_42 dim 1 : vector<8x128xf32>, i32 -> vector<8x128xf32>
    %c1_i32_43 = arith.constant 1 : i32
    %152 = tpu.dynamic_rotate %122 by %c1_i32_43 dim 1 : vector<8x128xf32>, i32 -> vector<8x128xf32>
    %153 = vector.shape_cast %7 : vector<1x128xi1> to vector<1x128xi1>
    %154 = vector.broadcast %153 : vector<1x128xi1> to vector<8x128xi1>
    %155 = arith.select %154, %122, %151 : vector<8x128xi1>, vector<8x128xf32>
    %156 = vector.shape_cast %10 : vector<1x128xi1> to vector<1x128xi1>
    %157 = vector.broadcast %156 : vector<1x128xi1> to vector<8x128xi1>
    %158 = arith.select %157, %122, %152 : vector<8x128xi1>, vector<8x128xf32>
    %159 = arith.subf %155, %158 : vector<8x128xf32>
    %160 = vector.broadcast %3 : vector<1x128xf32> to vector<8x128xf32>
    %161 = arith.mulf %159, %160 : vector<8x128xf32>
    %162 = arith.addf %68, %98 : vector<8x128xf32>
    %cst_44 = arith.constant 5.000000e-01 : f32
    %163 = vector.broadcast %cst_44 : f32 to vector<8x128xf32>
    %164 = arith.mulf %163, %162 : vector<8x128xf32>
    %165 = arith.addf %79, %139 : vector<8x128xf32>
    %cst_45 = arith.constant 5.000000e-01 : f32
    %166 = vector.broadcast %cst_45 : f32 to vector<8x128xf32>
    %167 = arith.mulf %166, %165 : vector<8x128xf32>
    %168 = arith.addf %120, %150 : vector<8x128xf32>
    %cst_46 = arith.constant 5.000000e-01 : f32
    %169 = vector.broadcast %cst_46 : f32 to vector<8x128xf32>
    %170 = arith.mulf %169, %168 : vector<8x128xf32>
    %171 = arith.addf %57, %109 : vector<8x128xf32>
    %172 = arith.addf %171, %161 : vector<8x128xf32>
    %173 = arith.mulf %57, %57 : vector<8x128xf32>
    %174 = arith.mulf %109, %109 : vector<8x128xf32>
    %175 = arith.addf %173, %174 : vector<8x128xf32>
    %176 = arith.mulf %161, %161 : vector<8x128xf32>
    %177 = arith.addf %175, %176 : vector<8x128xf32>
    %178 = arith.mulf %164, %164 : vector<8x128xf32>
    %179 = arith.mulf %167, %167 : vector<8x128xf32>
    %180 = arith.addf %178, %179 : vector<8x128xf32>
    %181 = arith.mulf %170, %170 : vector<8x128xf32>
    %182 = arith.addf %180, %181 : vector<8x128xf32>
    %cst_47 = arith.constant 2.000000e+00 : f32
    %183 = vector.broadcast %cst_47 : f32 to vector<8x128xf32>
    %184 = arith.mulf %183, %182 : vector<8x128xf32>
    %185 = arith.addf %177, %184 : vector<8x128xf32>
    %186 = math.sqrt %185 : vector<8x128xf32>
    %cst_48 = arith.constant 1.000000e-01 : f32
    %187 = vector.broadcast %cst_48 : f32 to vector<8x128xf32>
    %188 = arith.mulf %187, %186 : vector<8x128xf32>
    %cst_49 = arith.constant 1.000000e+00 : f32
    %189 = vector.broadcast %cst_49 : f32 to vector<8x128xf32>
    %190 = arith.addf %189, %188 : vector<8x128xf32>
    %cst_50 = arith.constant 5.000000e-01 : f32
    %191 = vector.broadcast %cst_50 : f32 to vector<8x128xf32>
    %192 = arith.mulf %191, %190 : vector<8x128xf32>
    %193 = arith.mulf %172, %172 : vector<8x128xf32>
    %194 = arith.mulf %192, %193 : vector<8x128xf32>
    %cst_51 = arith.constant 5.000000e-02 : f32
    %195 = vector.broadcast %cst_51 : f32 to vector<8x128xf32>
    %196 = arith.mulf %195, %186 : vector<8x128xf32>
    %cst_52 = arith.constant 5.000000e-01 : f32
    %197 = vector.broadcast %cst_52 : f32 to vector<8x128xf32>
    %198 = arith.addf %197, %196 : vector<8x128xf32>
    %199 = arith.mulf %198, %185 : vector<8x128xf32>
    %200 = arith.addf %194, %199 : vector<8x128xf32>
    %cst_53 = arith.constant 2.000000e-01 : f32
    %201 = vector.broadcast %cst_53 : f32 to vector<8x128xf32>
    %202 = arith.mulf %201, %186 : vector<8x128xf32>
    %cst_54 = arith.constant 1.000000e+00 : f32
    %203 = vector.broadcast %cst_54 : f32 to vector<8x128xf32>
    %204 = arith.addf %203, %202 : vector<8x128xf32>
    %205 = arith.mulf %204, %200 : vector<8x128xf32>
    %206 = arith.mulf %33, %205 : vector<8x128xf32>
    %c0_i32_55 = arith.constant 0 : i32
    %207 = arith.cmpi eq, %arg2, %c0_i32_55 : i32
    %208 = arith.extui %207 : i1 to i32
    %c0_i32_56 = arith.constant 0 : i32
    %209 = arith.cmpi ne, %208, %c0_i32_56 : i32
    scf.if %209 {
      %cst_65 = arith.constant 0.000000e+00 : f32
      %216 = vector.broadcast %cst_65 : f32 to vector<8x128xf32>
      %c0_66 = arith.constant 0 : index
      %c0_67 = arith.constant 0 : index
      %c0_68 = arith.constant 0 : index
      %c0_69 = arith.constant 0 : index
      %217 = vector.load %arg8[%c0_66, %c0_67, %c0_68, %c0_69] : memref<1x1x8x128xf32, #tpu.memory_space<vmem>>, vector<1x1x8x128xf32>
      %218 = vector.shape_cast %217 : vector<1x1x8x128xf32> to vector<8x128xf32>
      %219 = vector.shape_cast %216 : vector<8x128xf32> to vector<1x1x8x128xf32>
      tpu.vector_store %arg8[%c0_66, %c0_67, %c0_68, %c0_69], %219 {strides = array<i32>} : memref<1x1x8x128xf32, #tpu.memory_space<vmem>>, vector<1x1x8x128xf32>,
    } else {
    }
    %c0_57 = arith.constant 0 : index
    %c0_58 = arith.constant 0 : index
    %c0_59 = arith.constant 0 : index
    %c0_60 = arith.constant 0 : index
    %210 = vector.load %arg8[%c0_57, %c0_58, %c0_59, %c0_60] : memref<1x1x8x128xf32, #tpu.memory_space<vmem>>, vector<1x1x8x128xf32>
    %211 = vector.shape_cast %210 : vector<1x1x8x128xf32> to vector<8x128xf32>
    %212 = arith.addf %211, %206 : vector<8x128xf32>
    %c0_61 = arith.constant 0 : index
    %c0_62 = arith.constant 0 : index
    %c0_63 = arith.constant 0 : index
    %c0_64 = arith.constant 0 : index
    %213 = vector.load %arg8[%c0_61, %c0_62, %c0_63, %c0_64] : memref<1x1x8x128xf32, #tpu.memory_space<vmem>>, vector<1x1x8x128xf32>
    %214 = vector.shape_cast %213 : vector<1x1x8x128xf32> to vector<8x128xf32>
    %215 = vector.shape_cast %212 : vector<8x128xf32> to vector<1x1x8x128xf32>
    tpu.vector_store %arg8[%c0_61, %c0_62, %c0_63, %c0_64], %215 {strides = array<i32>} : memref<1x1x8x128xf32, #tpu.memory_space<vmem>>, vector<1x1x8x128xf32>,
    return
  }
  func.func @transform_0(%arg0: i32, %arg1: i32, %arg2: i32) -> (i32, i32, i32, i32) {
    %c1_i32 = arith.constant 1 : i32
    %0 = arith.muli %arg1, %c1_i32 : i32
    %1 = arith.addi %0, %arg2 : i32
    %c0_i32 = arith.constant 0 : i32
    %c0_i32_0 = arith.constant 0 : i32
    %c0_i32_1 = arith.constant 0 : i32
    return %arg0, %c0_i32, %1, %c0_i32_0 : i32, i32, i32, i32
  }
  func.func @transform_1(%arg0: i32, %arg1: i32, %arg2: i32) -> (i32, i32, i32, i32) {
    %c1_i32 = arith.constant 1 : i32
    %0 = arith.muli %arg1, %c1_i32 : i32
    %1 = arith.addi %0, %arg2 : i32
    %c0_i32 = arith.constant 0 : i32
    %c0_i32_0 = arith.constant 0 : i32
    %c0_i32_1 = arith.constant 0 : i32
    return %arg0, %1, %c0_i32, %c0_i32_0 : i32, i32, i32, i32
  }
  func.func @transform_2(%arg0: i32, %arg1: i32, %arg2: i32) -> (i32, i32, i32, i32) {
    %c1_i32 = arith.constant 1 : i32
    %0 = arith.muli %arg1, %c1_i32 : i32
    %1 = arith.addi %0, %arg2 : i32
    %c0_i32 = arith.constant 0 : i32
    %c0_i32_0 = arith.constant 0 : i32
    %c0_i32_1 = arith.constant 0 : i32
    return %arg0, %1, %c0_i32, %c0_i32_0 : i32, i32, i32, i32
  }
  func.func @transform_3(%arg0: i32, %arg1: i32, %arg2: i32) -> (i32, i32) {
    %c1_i32 = arith.constant 1 : i32
    %0 = arith.muli %arg1, %c1_i32 : i32
    %1 = arith.addi %0, %arg2 : i32
    %c0_i32 = arith.constant 0 : i32
    %c0_i32_0 = arith.constant 0 : i32
    return %1, %c0_i32 : i32, i32
  }
  func.func @transform_4(%arg0: i32, %arg1: i32, %arg2: i32) -> (i32, i32) {
    %c0_i32 = arith.constant 0 : i32
    %c0_i32_0 = arith.constant 0 : i32
    %c0_i32_1 = arith.constant 0 : i32
    return %c0_i32, %c0_i32_0 : i32, i32
  }
  func.func @transform_5(%arg0: i32, %arg1: i32, %arg2: i32) -> (i32, i32, i32, i32) {
    %c0_i32 = arith.constant 0 : i32
    %c0_i32_0 = arith.constant 0 : i32
    %c0_i32_1 = arith.constant 0 : i32
    return %arg0, %arg1, %c0_i32, %c0_i32_0 : i32, i32, i32, i32
  }
}

module attributes {stable_mosaic.version = 11 : i64} {
  func.func @_adaptive_elasticity_kernel(%arg0: i32, %arg1: i32, %arg2: i32, %arg3: memref<1x3x4x128xf32, #tpu.memory_space<vmem>>, %arg4: memref<1x1x3x128xf32, #tpu.memory_space<vmem>>, %arg5: memref<1x1x3x128xf32, #tpu.memory_space<vmem>>, %arg6: memref<4x128xf32, #tpu.memory_space<vmem>>, %arg7: memref<8x128xf32, #tpu.memory_space<vmem>>, %arg8: memref<1x1x8x128xf32, #tpu.memory_space<vmem>>) attributes {dimension_semantics = [#tpu.dimension_semantics<parallel>, #tpu.dimension_semantics<parallel>, #tpu.dimension_semantics<arbitrary>], iteration_bounds = array<i64: 2, 1, 1>, scalar_prefetch = 0 : i64, scratch_operands = 0 : i64, tpu.core_type = #tpu.core_type<tc>, window_params = [{transform_indices = @transform_0, window_bounds = array<i64: 1, 3, 4, 128>}, {transform_indices = @transform_1, window_bounds = array<i64: 1, 1, 3, 128>}, {transform_indices = @transform_2, window_bounds = array<i64: 1, 1, 3, 128>}, {transform_indices = @transform_3, window_bounds = array<i64: 4, 128>}, {pipeline_mode = #tpu.pipeline_mode<synchronous>, transform_indices = @transform_4, window_bounds = array<i64: 8, 128>}, {transform_indices = @transform_5, window_bounds = array<i64: 1, 1, 8, 128>}]} {
    %c1_i32 = arith.constant 1 : i32
    %0 = arith.muli %arg1, %c1_i32 : i32
    %1 = arith.addi %0, %arg2 : i32
    %c0 = arith.constant 0 : index
    %c0_0 = arith.constant 0 : index
    %2 = vector.load %arg7[%c0, %c0_0] : memref<8x128xf32, #tpu.memory_space<vmem>>, vector<8x128xf32>
    %3 = vector.extract_strided_slice %2 {offsets = [0, 0], sizes = [1, 128], strides = [1, 1]} : vector<8x128xf32> to vector<1x128xf32>
    %4 = vector.extract_strided_slice %2 {offsets = [1, 0], sizes = [1, 128], strides = [1, 1]} : vector<8x128xf32> to vector<1x128xf32>
    %5 = vector.extract_strided_slice %2 {offsets = [2, 0], sizes = [1, 128], strides = [1, 1]} : vector<8x128xf32> to vector<1x128xf32>
    %cst = arith.constant 0.000000e+00 : f32
    %6 = vector.broadcast %cst : f32 to vector<1x128xf32>
    %7 = arith.cmpf ogt, %5, %6 : vector<1x128xf32>
    %8 = vector.extract_strided_slice %2 {offsets = [3, 0], sizes = [1, 128], strides = [1, 1]} : vector<8x128xf32> to vector<1x128xf32>
    %cst_1 = arith.constant 0.000000e+00 : f32
    %9 = vector.broadcast %cst_1 : f32 to vector<1x128xf32>
    %10 = arith.cmpf ogt, %8, %9 : vector<1x128xf32>
    %11 = vector.extract_strided_slice %2 {offsets = [4, 0], sizes = [1, 128], strides = [1, 1]} : vector<8x128xf32> to vector<1x128xf32>
    %cst_2 = arith.constant 0.000000e+00 : f32
    %12 = vector.broadcast %cst_2 : f32 to vector<1x128xf32>
    %13 = arith.cmpf ogt, %11, %12 : vector<1x128xf32>
    %14 = vector.extract_strided_slice %2 {offsets = [5, 0], sizes = [1, 128], strides = [1, 1]} : vector<8x128xf32> to vector<1x128xf32>
    %cst_3 = arith.constant 0.000000e+00 : f32
    %15 = vector.broadcast %cst_3 : f32 to vector<1x128xf32>
    %16 = arith.cmpf ogt, %14, %15 : vector<1x128xf32>
    %17 = tpu.iota {dimensions = array<i32: 0>} : vector<4x1xi32>
    %c4_i32 = arith.constant 4 : i32
    %18 = arith.muli %1, %c4_i32 : i32
    %19 = vector.broadcast %18 : i32 to vector<4x1xi32>
    %20 = arith.addi %17, %19 : vector<4x1xi32>
    %c0_i32 = arith.constant 0 : i32
    %21 = vector.broadcast %c0_i32 : i32 to vector<4x1xi32>
    %22 = arith.cmpi eq, %20, %21 : vector<4x1xi32>
    %c3_i32 = arith.constant 3 : i32
    %23 = vector.broadcast %c3_i32 : i32 to vector<4x1xi32>
    %24 = arith.cmpi eq, %20, %23 : vector<4x1xi32>
    %25 = arith.ori %22, %24 : vector<4x1xi1>
    %cst_4 = arith.constant 1.000000e+00 : f32
    %cst_5 = arith.constant 5.000000e-01 : f32
    %26 = vector.broadcast %cst_4 : f32 to vector<4x1xf32>
    %27 = vector.broadcast %cst_5 : f32 to vector<4x1xf32>
    %28 = arith.select %25, %26, %27 : vector<4x1xi1>, vector<4x1xf32>
    %c0_6 = arith.constant 0 : index
    %c0_7 = arith.constant 0 : index
    %c0_8 = arith.constant 0 : index
    %c0_9 = arith.constant 0 : index
    %29 = vector.load %arg4[%c0_6, %c0_7, %c0_8, %c0_9] : memref<1x1x3x128xf32, #tpu.memory_space<vmem>>, vector<1x1x3x128xf32>
    %30 = vector.shape_cast %29 : vector<1x1x3x128xf32> to vector<3x128xf32>
    %c0_10 = arith.constant 0 : index
    %c0_11 = arith.constant 0 : index
    %c0_12 = arith.constant 0 : index
    %c0_13 = arith.constant 0 : index
    %31 = vector.load %arg5[%c0_10, %c0_11, %c0_12, %c0_13] : memref<1x1x3x128xf32, #tpu.memory_space<vmem>>, vector<1x1x3x128xf32>
    %32 = vector.shape_cast %31 : vector<1x1x3x128xf32> to vector<3x128xf32>
    %c0_14 = arith.constant 0 : index
    %c0_15 = arith.constant 0 : index
    %33 = vector.load %arg6[%c0_14, %c0_15] : memref<4x128xf32, #tpu.memory_space<vmem>>, vector<4x128xf32>
    %c0_16 = arith.constant 0 : index
    %c0_17 = arith.constant 0 : index
    %c0_18 = arith.constant 0 : index
    %c0_19 = arith.constant 0 : index
    %34 = vector.load %arg3[%c0_16, %c0_17, %c0_18, %c0_19] : memref<1x3x4x128xf32, #tpu.memory_space<vmem>>, vector<1x1x4x128xf32>
    %35 = vector.shape_cast %34 : vector<1x1x4x128xf32> to vector<4x128xf32>
    %36 = vector.extract_strided_slice %30 {offsets = [0, 0], sizes = [1, 128], strides = [1, 1]} : vector<3x128xf32> to vector<1x128xf32>
    %37 = vector.extract_strided_slice %32 {offsets = [0, 0], sizes = [1, 128], strides = [1, 1]} : vector<3x128xf32> to vector<1x128xf32>
    %38 = vector.extract_strided_slice %35 {offsets = [1, 0], sizes = [3, 128], strides = [1, 1]} : vector<4x128xf32> to vector<3x128xf32>
    %39 = tpu.concatenate %38, %37 in 0 : vector<3x128xf32>, vector<1x128xf32> -> vector<4x128xf32>
    %40 = vector.extract_strided_slice %35 {offsets = [0, 0], sizes = [3, 128], strides = [1, 1]} : vector<4x128xf32> to vector<3x128xf32>
    %41 = tpu.concatenate %36, %40 in 0 : vector<1x128xf32>, vector<3x128xf32> -> vector<4x128xf32>
    %42 = arith.subf %39, %41 : vector<4x128xf32>
    %43 = vector.broadcast %28 : vector<4x1xf32> to vector<4x128xf32>
    %44 = arith.mulf %42, %43 : vector<4x128xf32>
    %c124_i32 = arith.constant 124 : i32
    %45 = tpu.dynamic_rotate %35 by %c124_i32 dim 1 : vector<4x128xf32>, i32 -> vector<4x128xf32>
    %c4_i32_20 = arith.constant 4 : i32
    %46 = tpu.dynamic_rotate %35 by %c4_i32_20 dim 1 : vector<4x128xf32>, i32 -> vector<4x128xf32>
    %47 = vector.shape_cast %13 : vector<1x128xi1> to vector<1x128xi1>
    %48 = vector.broadcast %47 : vector<1x128xi1> to vector<4x128xi1>
    %49 = arith.select %48, %35, %45 : vector<4x128xi1>, vector<4x128xf32>
    %50 = vector.shape_cast %16 : vector<1x128xi1> to vector<1x128xi1>
    %51 = vector.broadcast %50 : vector<1x128xi1> to vector<4x128xi1>
    %52 = arith.select %51, %35, %46 : vector<4x128xi1>, vector<4x128xf32>
    %53 = arith.subf %49, %52 : vector<4x128xf32>
    %54 = vector.broadcast %4 : vector<1x128xf32> to vector<4x128xf32>
    %55 = arith.mulf %53, %54 : vector<4x128xf32>
    %c127_i32 = arith.constant 127 : i32
    %56 = tpu.dynamic_rotate %35 by %c127_i32 dim 1 : vector<4x128xf32>, i32 -> vector<4x128xf32>
    %c1_i32_21 = arith.constant 1 : i32
    %57 = tpu.dynamic_rotate %35 by %c1_i32_21 dim 1 : vector<4x128xf32>, i32 -> vector<4x128xf32>
    %58 = vector.shape_cast %7 : vector<1x128xi1> to vector<1x128xi1>
    %59 = vector.broadcast %58 : vector<1x128xi1> to vector<4x128xi1>
    %60 = arith.select %59, %35, %56 : vector<4x128xi1>, vector<4x128xf32>
    %61 = vector.shape_cast %10 : vector<1x128xi1> to vector<1x128xi1>
    %62 = vector.broadcast %61 : vector<1x128xi1> to vector<4x128xi1>
    %63 = arith.select %62, %35, %57 : vector<4x128xi1>, vector<4x128xf32>
    %64 = arith.subf %60, %63 : vector<4x128xf32>
    %65 = vector.broadcast %3 : vector<1x128xf32> to vector<4x128xf32>
    %66 = arith.mulf %64, %65 : vector<4x128xf32>
    %c0_22 = arith.constant 0 : index
    %c1 = arith.constant 1 : index
    %c0_23 = arith.constant 0 : index
    %c0_24 = arith.constant 0 : index
    %67 = vector.load %arg3[%c0_22, %c1, %c0_23, %c0_24] : memref<1x3x4x128xf32, #tpu.memory_space<vmem>>, vector<1x1x4x128xf32>
    %68 = vector.shape_cast %67 : vector<1x1x4x128xf32> to vector<4x128xf32>
    %69 = vector.extract_strided_slice %30 {offsets = [1, 0], sizes = [1, 128], strides = [1, 1]} : vector<3x128xf32> to vector<1x128xf32>
    %70 = vector.extract_strided_slice %32 {offsets = [1, 0], sizes = [1, 128], strides = [1, 1]} : vector<3x128xf32> to vector<1x128xf32>
    %71 = vector.extract_strided_slice %68 {offsets = [1, 0], sizes = [3, 128], strides = [1, 1]} : vector<4x128xf32> to vector<3x128xf32>
    %72 = tpu.concatenate %71, %70 in 0 : vector<3x128xf32>, vector<1x128xf32> -> vector<4x128xf32>
    %73 = vector.extract_strided_slice %68 {offsets = [0, 0], sizes = [3, 128], strides = [1, 1]} : vector<4x128xf32> to vector<3x128xf32>
    %74 = tpu.concatenate %69, %73 in 0 : vector<1x128xf32>, vector<3x128xf32> -> vector<4x128xf32>
    %75 = arith.subf %72, %74 : vector<4x128xf32>
    %76 = vector.broadcast %28 : vector<4x1xf32> to vector<4x128xf32>
    %77 = arith.mulf %75, %76 : vector<4x128xf32>
    %c124_i32_25 = arith.constant 124 : i32
    %78 = tpu.dynamic_rotate %68 by %c124_i32_25 dim 1 : vector<4x128xf32>, i32 -> vector<4x128xf32>
    %c4_i32_26 = arith.constant 4 : i32
    %79 = tpu.dynamic_rotate %68 by %c4_i32_26 dim 1 : vector<4x128xf32>, i32 -> vector<4x128xf32>
    %80 = vector.shape_cast %13 : vector<1x128xi1> to vector<1x128xi1>
    %81 = vector.broadcast %80 : vector<1x128xi1> to vector<4x128xi1>
    %82 = arith.select %81, %68, %78 : vector<4x128xi1>, vector<4x128xf32>
    %83 = vector.shape_cast %16 : vector<1x128xi1> to vector<1x128xi1>
    %84 = vector.broadcast %83 : vector<1x128xi1> to vector<4x128xi1>
    %85 = arith.select %84, %68, %79 : vector<4x128xi1>, vector<4x128xf32>
    %86 = arith.subf %82, %85 : vector<4x128xf32>
    %87 = vector.broadcast %4 : vector<1x128xf32> to vector<4x128xf32>
    %88 = arith.mulf %86, %87 : vector<4x128xf32>
    %c127_i32_27 = arith.constant 127 : i32
    %89 = tpu.dynamic_rotate %68 by %c127_i32_27 dim 1 : vector<4x128xf32>, i32 -> vector<4x128xf32>
    %c1_i32_28 = arith.constant 1 : i32
    %90 = tpu.dynamic_rotate %68 by %c1_i32_28 dim 1 : vector<4x128xf32>, i32 -> vector<4x128xf32>
    %91 = vector.shape_cast %7 : vector<1x128xi1> to vector<1x128xi1>
    %92 = vector.broadcast %91 : vector<1x128xi1> to vector<4x128xi1>
    %93 = arith.select %92, %68, %89 : vector<4x128xi1>, vector<4x128xf32>
    %94 = vector.shape_cast %10 : vector<1x128xi1> to vector<1x128xi1>
    %95 = vector.broadcast %94 : vector<1x128xi1> to vector<4x128xi1>
    %96 = arith.select %95, %68, %90 : vector<4x128xi1>, vector<4x128xf32>
    %97 = arith.subf %93, %96 : vector<4x128xf32>
    %98 = vector.broadcast %3 : vector<1x128xf32> to vector<4x128xf32>
    %99 = arith.mulf %97, %98 : vector<4x128xf32>
    %c0_29 = arith.constant 0 : index
    %c2 = arith.constant 2 : index
    %c0_30 = arith.constant 0 : index
    %c0_31 = arith.constant 0 : index
    %100 = vector.load %arg3[%c0_29, %c2, %c0_30, %c0_31] : memref<1x3x4x128xf32, #tpu.memory_space<vmem>>, vector<1x1x4x128xf32>
    %101 = vector.shape_cast %100 : vector<1x1x4x128xf32> to vector<4x128xf32>
    %102 = vector.extract_strided_slice %30 {offsets = [2, 0], sizes = [1, 128], strides = [1, 1]} : vector<3x128xf32> to vector<1x128xf32>
    %103 = vector.extract_strided_slice %32 {offsets = [2, 0], sizes = [1, 128], strides = [1, 1]} : vector<3x128xf32> to vector<1x128xf32>
    %104 = vector.extract_strided_slice %101 {offsets = [1, 0], sizes = [3, 128], strides = [1, 1]} : vector<4x128xf32> to vector<3x128xf32>
    %105 = tpu.concatenate %104, %103 in 0 : vector<3x128xf32>, vector<1x128xf32> -> vector<4x128xf32>
    %106 = vector.extract_strided_slice %101 {offsets = [0, 0], sizes = [3, 128], strides = [1, 1]} : vector<4x128xf32> to vector<3x128xf32>
    %107 = tpu.concatenate %102, %106 in 0 : vector<1x128xf32>, vector<3x128xf32> -> vector<4x128xf32>
    %108 = arith.subf %105, %107 : vector<4x128xf32>
    %109 = vector.broadcast %28 : vector<4x1xf32> to vector<4x128xf32>
    %110 = arith.mulf %108, %109 : vector<4x128xf32>
    %c124_i32_32 = arith.constant 124 : i32
    %111 = tpu.dynamic_rotate %101 by %c124_i32_32 dim 1 : vector<4x128xf32>, i32 -> vector<4x128xf32>
    %c4_i32_33 = arith.constant 4 : i32
    %112 = tpu.dynamic_rotate %101 by %c4_i32_33 dim 1 : vector<4x128xf32>, i32 -> vector<4x128xf32>
    %113 = vector.shape_cast %13 : vector<1x128xi1> to vector<1x128xi1>
    %114 = vector.broadcast %113 : vector<1x128xi1> to vector<4x128xi1>
    %115 = arith.select %114, %101, %111 : vector<4x128xi1>, vector<4x128xf32>
    %116 = vector.shape_cast %16 : vector<1x128xi1> to vector<1x128xi1>
    %117 = vector.broadcast %116 : vector<1x128xi1> to vector<4x128xi1>
    %118 = arith.select %117, %101, %112 : vector<4x128xi1>, vector<4x128xf32>
    %119 = arith.subf %115, %118 : vector<4x128xf32>
    %120 = vector.broadcast %4 : vector<1x128xf32> to vector<4x128xf32>
    %121 = arith.mulf %119, %120 : vector<4x128xf32>
    %c127_i32_34 = arith.constant 127 : i32
    %122 = tpu.dynamic_rotate %101 by %c127_i32_34 dim 1 : vector<4x128xf32>, i32 -> vector<4x128xf32>
    %c1_i32_35 = arith.constant 1 : i32
    %123 = tpu.dynamic_rotate %101 by %c1_i32_35 dim 1 : vector<4x128xf32>, i32 -> vector<4x128xf32>
    %124 = vector.shape_cast %7 : vector<1x128xi1> to vector<1x128xi1>
    %125 = vector.broadcast %124 : vector<1x128xi1> to vector<4x128xi1>
    %126 = arith.select %125, %101, %122 : vector<4x128xi1>, vector<4x128xf32>
    %127 = vector.shape_cast %10 : vector<1x128xi1> to vector<1x128xi1>
    %128 = vector.broadcast %127 : vector<1x128xi1> to vector<4x128xi1>
    %129 = arith.select %128, %101, %123 : vector<4x128xi1>, vector<4x128xf32>
    %130 = arith.subf %126, %129 : vector<4x128xf32>
    %131 = vector.broadcast %3 : vector<1x128xf32> to vector<4x128xf32>
    %132 = arith.mulf %130, %131 : vector<4x128xf32>
    %133 = arith.addf %55, %77 : vector<4x128xf32>
    %cst_36 = arith.constant 5.000000e-01 : f32
    %134 = vector.broadcast %cst_36 : f32 to vector<4x128xf32>
    %135 = arith.mulf %134, %133 : vector<4x128xf32>
    %136 = arith.addf %66, %110 : vector<4x128xf32>
    %cst_37 = arith.constant 5.000000e-01 : f32
    %137 = vector.broadcast %cst_37 : f32 to vector<4x128xf32>
    %138 = arith.mulf %137, %136 : vector<4x128xf32>
    %139 = arith.addf %99, %121 : vector<4x128xf32>
    %cst_38 = arith.constant 5.000000e-01 : f32
    %140 = vector.broadcast %cst_38 : f32 to vector<4x128xf32>
    %141 = arith.mulf %140, %139 : vector<4x128xf32>
    %142 = arith.addf %44, %88 : vector<4x128xf32>
    %143 = arith.addf %142, %132 : vector<4x128xf32>
    %144 = arith.mulf %44, %44 : vector<4x128xf32>
    %145 = arith.mulf %88, %88 : vector<4x128xf32>
    %146 = arith.addf %144, %145 : vector<4x128xf32>
    %147 = arith.mulf %132, %132 : vector<4x128xf32>
    %148 = arith.addf %146, %147 : vector<4x128xf32>
    %149 = arith.mulf %135, %135 : vector<4x128xf32>
    %150 = arith.mulf %138, %138 : vector<4x128xf32>
    %151 = arith.addf %149, %150 : vector<4x128xf32>
    %152 = arith.mulf %141, %141 : vector<4x128xf32>
    %153 = arith.addf %151, %152 : vector<4x128xf32>
    %cst_39 = arith.constant 2.000000e+00 : f32
    %154 = vector.broadcast %cst_39 : f32 to vector<4x128xf32>
    %155 = arith.mulf %154, %153 : vector<4x128xf32>
    %156 = arith.addf %148, %155 : vector<4x128xf32>
    %157 = math.sqrt %156 : vector<4x128xf32>
    %cst_40 = arith.constant 1.000000e-01 : f32
    %158 = vector.broadcast %cst_40 : f32 to vector<4x128xf32>
    %159 = arith.mulf %158, %157 : vector<4x128xf32>
    %cst_41 = arith.constant 1.000000e+00 : f32
    %160 = vector.broadcast %cst_41 : f32 to vector<4x128xf32>
    %161 = arith.addf %160, %159 : vector<4x128xf32>
    %cst_42 = arith.constant 5.000000e-01 : f32
    %162 = vector.broadcast %cst_42 : f32 to vector<4x128xf32>
    %163 = arith.mulf %162, %161 : vector<4x128xf32>
    %164 = arith.mulf %143, %143 : vector<4x128xf32>
    %165 = arith.mulf %163, %164 : vector<4x128xf32>
    %cst_43 = arith.constant 5.000000e-02 : f32
    %166 = vector.broadcast %cst_43 : f32 to vector<4x128xf32>
    %167 = arith.mulf %166, %157 : vector<4x128xf32>
    %cst_44 = arith.constant 5.000000e-01 : f32
    %168 = vector.broadcast %cst_44 : f32 to vector<4x128xf32>
    %169 = arith.addf %168, %167 : vector<4x128xf32>
    %170 = arith.mulf %169, %156 : vector<4x128xf32>
    %171 = arith.addf %165, %170 : vector<4x128xf32>
    %cst_45 = arith.constant 2.000000e-01 : f32
    %172 = vector.broadcast %cst_45 : f32 to vector<4x128xf32>
    %173 = arith.mulf %172, %157 : vector<4x128xf32>
    %cst_46 = arith.constant 1.000000e+00 : f32
    %174 = vector.broadcast %cst_46 : f32 to vector<4x128xf32>
    %175 = arith.addf %174, %173 : vector<4x128xf32>
    %176 = arith.mulf %175, %171 : vector<4x128xf32>
    %177 = arith.mulf %33, %176 : vector<4x128xf32>
    %c0_i32_47 = arith.constant 0 : i32
    %178 = arith.cmpi eq, %arg2, %c0_i32_47 : i32
    %179 = arith.extui %178 : i1 to i32
    %c0_i32_48 = arith.constant 0 : i32
    %180 = arith.cmpi ne, %179, %c0_i32_48 : i32
    scf.if %180 {
      %cst_58 = arith.constant 0.000000e+00 : f32
      %189 = vector.broadcast %cst_58 : f32 to vector<8x128xf32>
      %c0_59 = arith.constant 0 : index
      %c0_60 = arith.constant 0 : index
      %c0_61 = arith.constant 0 : index
      %c0_62 = arith.constant 0 : index
      %190 = vector.load %arg8[%c0_59, %c0_60, %c0_61, %c0_62] : memref<1x1x8x128xf32, #tpu.memory_space<vmem>>, vector<1x1x8x128xf32>
      %191 = vector.shape_cast %190 : vector<1x1x8x128xf32> to vector<8x128xf32>
      %192 = vector.shape_cast %189 : vector<8x128xf32> to vector<1x1x8x128xf32>
      tpu.vector_store %arg8[%c0_59, %c0_60, %c0_61, %c0_62], %192 {strides = array<i32>} : memref<1x1x8x128xf32, #tpu.memory_space<vmem>>, vector<1x1x8x128xf32>,
    } else {
    }
    %c0_49 = arith.constant 0 : index
    %c0_50 = arith.constant 0 : index
    %c0_51 = arith.constant 0 : index
    %c0_52 = arith.constant 0 : index
    %181 = vector.load %arg8[%c0_49, %c0_50, %c0_51, %c0_52] : memref<1x1x8x128xf32, #tpu.memory_space<vmem>>, vector<1x1x1x128xf32>
    %182 = vector.shape_cast %181 : vector<1x1x1x128xf32> to vector<1x128xf32>
    %cst_53 = arith.constant dense<0.000000e+00> : vector<128xf32>
    %183 = vector.multi_reduction <add>, %177, %cst_53 [0] : vector<4x128xf32> to vector<128xf32>
    %184 = vector.shape_cast %183 : vector<128xf32> to vector<1x128xf32>
    %185 = arith.addf %182, %184 : vector<1x128xf32>
    %c0_54 = arith.constant 0 : index
    %c0_55 = arith.constant 0 : index
    %c0_56 = arith.constant 0 : index
    %c0_57 = arith.constant 0 : index
    %186 = vector.load %arg8[%c0_54, %c0_55, %c0_56, %c0_57] : memref<1x1x8x128xf32, #tpu.memory_space<vmem>>, vector<1x1x1x128xf32>
    %187 = vector.shape_cast %186 : vector<1x1x1x128xf32> to vector<1x128xf32>
    %188 = vector.shape_cast %185 : vector<1x128xf32> to vector<1x1x1x128xf32>
    tpu.vector_store %arg8[%c0_54, %c0_55, %c0_56, %c0_57], %188 {strides = array<i32>} : memref<1x1x8x128xf32, #tpu.memory_space<vmem>>, vector<1x1x1x128xf32>,
    return
  }
  func.func @transform_0(%arg0: i32, %arg1: i32, %arg2: i32) -> (i32, i32, i32, i32) {
    %c1_i32 = arith.constant 1 : i32
    %0 = arith.muli %arg1, %c1_i32 : i32
    %1 = arith.addi %0, %arg2 : i32
    %c0_i32 = arith.constant 0 : i32
    %c0_i32_0 = arith.constant 0 : i32
    %c0_i32_1 = arith.constant 0 : i32
    return %arg0, %c0_i32, %1, %c0_i32_0 : i32, i32, i32, i32
  }
  func.func @transform_1(%arg0: i32, %arg1: i32, %arg2: i32) -> (i32, i32, i32, i32) {
    %c1_i32 = arith.constant 1 : i32
    %0 = arith.muli %arg1, %c1_i32 : i32
    %1 = arith.addi %0, %arg2 : i32
    %c0_i32 = arith.constant 0 : i32
    %c0_i32_0 = arith.constant 0 : i32
    %c0_i32_1 = arith.constant 0 : i32
    return %arg0, %1, %c0_i32, %c0_i32_0 : i32, i32, i32, i32
  }
  func.func @transform_2(%arg0: i32, %arg1: i32, %arg2: i32) -> (i32, i32, i32, i32) {
    %c1_i32 = arith.constant 1 : i32
    %0 = arith.muli %arg1, %c1_i32 : i32
    %1 = arith.addi %0, %arg2 : i32
    %c0_i32 = arith.constant 0 : i32
    %c0_i32_0 = arith.constant 0 : i32
    %c0_i32_1 = arith.constant 0 : i32
    return %arg0, %1, %c0_i32, %c0_i32_0 : i32, i32, i32, i32
  }
  func.func @transform_3(%arg0: i32, %arg1: i32, %arg2: i32) -> (i32, i32) {
    %c1_i32 = arith.constant 1 : i32
    %0 = arith.muli %arg1, %c1_i32 : i32
    %1 = arith.addi %0, %arg2 : i32
    %c0_i32 = arith.constant 0 : i32
    %c0_i32_0 = arith.constant 0 : i32
    return %1, %c0_i32 : i32, i32
  }
  func.func @transform_4(%arg0: i32, %arg1: i32, %arg2: i32) -> (i32, i32) {
    %c0_i32 = arith.constant 0 : i32
    %c0_i32_0 = arith.constant 0 : i32
    %c0_i32_1 = arith.constant 0 : i32
    return %c0_i32, %c0_i32_0 : i32, i32
  }
  func.func @transform_5(%arg0: i32, %arg1: i32, %arg2: i32) -> (i32, i32, i32, i32) {
    %c0_i32 = arith.constant 0 : i32
    %c0_i32_0 = arith.constant 0 : i32
    %c0_i32_1 = arith.constant 0 : i32
    return %arg0, %arg1, %c0_i32, %c0_i32_0 : i32, i32, i32, i32
  }
}

</mosaic_0001>

<bundles_post_ra>
// kernel: learnable_adaptive_elasticity_loss.3
= control target key start
LH: loop header
LB: loop body
LE: loop exit
PB: predicated region body
PF: predicated region fallthrough
CT: control target
= control target key end

     0   :  { %s1323_s18 = smov 0   ;;  %s1325_s19 = smov 0   ;;  %s2173_s0 = inlined_call_operand.vmem [shape: f32[2,3,16,256], index: 0, kind: input, shape index: {}]   ;;  %s2174_s1 = inlined_call_operand.vmem [shape: f32[2,1,3,256], index: 1, kind: input, shape index: {}]   ;;  %s2175_s2 = inlined_call_operand.vmem [shape: f32[2,1,3,256], index: 2, kind: input, shape index: {}]   ;;  %s2176_s3 = inlined_call_operand.vmem [shape: f32[16,256], index: 3, kind: input, shape index: {}]   ;;  %s2177_s4 = inlined_call_operand.vmem [shape: f32[8,256], index: 4, kind: input, shape index: {}]   ;;  %s2178_s5 = inlined_call_operand.vmem [shape: f32[2,1,8,256], index: 5, kind: output, shape index: {}]  }
   0x1   :  { %s1327_s20 = smov 0  }
   0x2 LB: > { %s34_s21 = sadd.s32 1, %s1281_s19  ;;  %p1202_p0 = scmp.ge.s32.totalorder %s1285_s20, 1  ;;  %s1285_s20 = sphi %s1327_s20, %s15_s20   ;;  %s1281_s19 = sphi %s1325_s19, %s2212_s19   ;;  %s1277_s18 = sphi %s1323_s18, %s2211_s18  }
   0x3   : > { %p36_p1 = scmp.ge.s32.totalorder %s34_s21, 2  ;;  %p276_p2 = scmp.lt.s32.totalorder %s1285_s20, 3 }
   0x5   : > { %s2214_s21 = smov (%p36_p1, %s34_s21), 0  ;;  %p277_p3 = pnand %p1202_p0, %p276_p2 }
   0x7   : > { %280 = sbr.rel (%p277_p3) target bundleno = 308 (0x134), region = 40 }
   0xc   : > { %p343_p4 = scmp.lt.s32.totalorder %s1277_s18, 1  ;;  %s1287_s26 = smov 112   ;;  %v395_v14 = vld [vmem:[%s2177_s4] sm:$0xff]  ;;  %v1477_v15 = vld [vmem:[%s2177_s4 + $0x8] sm:$0xff]  ;;  %v399_v16 = vlaneseq  ;;  %v1291_v19 = vmov 0  }
   0xd   : > { %s1288_s27 = smov 16   ;;  %s1289_s28 = smov 127   ;;  %vm397_vm0 = vcmp.gt.f32.partialorder %v395_v14, 0.0  ;;  %vm398_vm1 = vcmp.gt.f32.partialorder %v1477_v15, 0.0  ;;  %v1520_v31 = vperm.slane %v395_v14, 1  ;;  %v1531_v34 = vperm.slane %v1477_v15, 1 }
   0xe   : > { %s2216_s18 = smov (!%p343_p4, %s1277_s18), 1  ;;  %s1290_s29 = smov 1   ;;  %v1484_v18 = vand.u32 127, %v399_v16  ;;  %v1487_v20 = vsel %vm397_vm0, 1, %v1291_v19  ;;  %v1489_v21 = vsel %vm398_vm1, 1, %v1291_v19  ;;  %v1514_v28 = vshrl.u32 %v399_v16, 7 }
   0xf   : > { %s1223_s22 = smul.u32 96, %s2216_s18  ;;  %s1220_s9 = sshll.u32 %s2216_s18, 3  ;;  %v514_v22 = vperm.slane %v1487_v20, 4  ;;  %v515_v23 = vperm.slane %v1489_v21, 4  ;;  %v1533_v35 = vperm.slane %v395_v14, 0  ;;  %v522_v44 = vperm.slane %v1487_v20, 5 }
  0x10   : > { %vm494_vm2 = vcmp.lt.s32.totalorder %v1484_v18, 112  ;;  %s374_s12 = scalar_lea.vmem %s2175_s2, %s1220_s9  ;;  %s363_s15 = scalar_lea.vmem %s2174_s1, %s1220_s9  ;;  %v1542_v41 = vadd.s32 8, %v1514_v28  ;;  %vm432_vm5 = vcmp.lt.s32.totalorder %v1514_v28, 7  ;;  %v523_v45 = vperm.slane %v1489_v21, 5 }
  0x11   : > { %s1347_s25 = scalar_lea.vmem %s2173_s0, %s1223_s22  ;;  %v1516_v29 = vld [vmem:[%s374_s12] sm:$0x77]  ;;  %vm1522_vm3 = vcmp.eq.s32.totalorder %v514_v22, 1  ;;  %vm1526_vm4 = vcmp.eq.s32.totalorder %v515_v23, 1  ;;  %vm456_vm6 = vcmp.lt.s32.totalorder %v1514_v28, 1  ;;  %vm507_vm8 = vcmp.lt.s32.totalorder %v1484_v18, 16 }
  0x12   : > { %v1350_v0 = vld [vmem:[%s1347_s25 + $0x8] sm:$0xff]  ;;  %v1353_v1 = vld [vmem:[%s1347_s25] sm:$0xff]  ;;  %v1362_v2 = vld [vmem:[%s1347_s25 + $0x18] sm:$0xff]  ;;  %2183 = vst [vmem:[#allocation2_spill] sm:$0xff] %v1516_v29  ;;  %v605_v39 = vperm.slane %v1516_v29, 1  ;;  %v606_v40 = vperm.slane %v1516_v29, 5 }
  0x13   : > { %488 = vrot.lane.b32.xlu1 %v1350_v0, %s1287_s26  ;;  %484 = vrot.lane.b32.xlu0 %v1353_v1, %s1287_s26  ;;  %v1365_v3 = vld [vmem:[%s1347_s25 + $0x10] sm:$0xff]  ;;  %v1392_v4 = vld [vmem:[%s1347_s25 + $0x20] sm:$0xff]  ;;  %vm409_vm7 = vcmp.eq.s32.totalorder %v1542_v41, 15  ;;  %vm1574_vm9 = vcmp.eq.s32.totalorder %v522_v44, 1  ;;  %vm406_vm10 = vcmp.eq.s32.totalorder %v1514_v28, 0  ;;  %vm1583_vm11 = vcmp.eq.s32.totalorder %v523_v45, 1 }
  0x14   : > { %499 = vrot.lane.b32.xlu2 %v1353_v1, %s1288_s27  ;;  %v1399_v5 = vld [vmem:[%s1347_s25 + $0x30] sm:$0xff]  ;;  %v1404_v6 = vld [vmem:[%s1347_s25 + $0x38] sm:$0xff]  ;;  %v1407_v7 = vld [vmem:[%s1347_s25 + $0x28] sm:$0xff]  ;;  %v597_v37 = vrot.slane %v1392_v4, 1  ;;  %v615_v48 = vrot.slane %v1392_v4, 7  ;;  %v609_v55 = vperm.slane %v605_v39, 1 }
  0x15   : > { %v1422_v8 = vld [vmem:[%s1347_s25 + $0x50] sm:$0xff]  ;;  %v1425_v9 = vld [vmem:[%s1347_s25 + $0x40] sm:$0xff]  ;;  %v1432_v10 = vld [vmem:[%s1347_s25 + $0x48] sm:$0xff]  ;;  %v599_v38 = vrot.slane %v1399_v5, 1  ;;  %v598_v42 = vrot.slane %v1407_v7, 1  ;;  %v600_v43 = vrot.slane %v1404_v6, 1 }
  0x16   : > { %v1437_v11 = vld [vmem:[%s1347_s25 + $0x58] sm:$0xff]  ;;  %v1535_v36 = vld [vmem:[%s363_s15] sm:$0x77]  ;;  %v616_v49 = vrot.slane %v1407_v7, 7  ;;  %v617_v50 = vrot.slane %v1399_v5, 7  ;;  %v618_v51 = vrot.slane %v1404_v6, 7 }
  0x17   : > { %2188 = vst [vmem:[#allocation3_spill] sm:$0xff] %v1535_v36  ;;  %v623_v46 = vperm.slane %v1535_v36, 1  ;;  %v624_v47 = vperm.slane %v1535_v36, 5  ;;  %v603_v54 = vsel %vm432_vm5, %v599_v38, %v597_v37  ;;  %v610_v56 = vperm.slane %v606_v40, 1 }
  0x18   : > { %v604_v59 = vsel %vm432_vm5, %v600_v43, %v598_v42  ;;  %v621_v14 = vsel %vm456_vm6, %v617_v50, %v615_v48  ;;  %v622_v16 = vsel %vm456_vm6, %v618_v51, %v616_v49  ;;  %v1589_v22 = vsel %vm409_vm7, %v609_v55, %v603_v54 }
  0x19   : > { %v627_v61 = vperm.slane %v623_v46, 1  ;;  %v628_v62 = vperm.slane %v624_v47, 1  ;;  %v1593_v23 = vsel %vm409_vm7, %v610_v56, %v604_v59  ;;  %v1292_v39 = vmov 0.5  }
  0x1a   : > { %v1605_v40 = vsel %vm406_vm10, 1.0, %v1292_v39  ;;  %v601_v44 = vsel %vm432_vm5, %v597_v37, %v599_v38  ;;  %v602_v45 = vsel %vm432_vm5, %v598_v42, %v600_v43  ;;  %v726_v43 = vrot.slane %v1425_v9, 1 }
  0x1b   : > { %490 = vrot.lane.b32.xlu1 %v1362_v2, %s1287_s26  ;;  %486 = vrot.lane.b32.xlu0 %v1365_v3, %s1287_s26  ;;  %v728_v38 = vrot.slane %v1422_v8, 1  ;;  %vm548_vm12 = vcmp.lt.s32.totalorder %v1484_v18, 127  ;;  %vm561_vm15 = vcmp.lt.s32.totalorder %v1484_v18, 1 }
  0x1c   : > { %501 = vrot.lane.b32.xlu2 %v1365_v3, %s1288_s27 }
  0x23   : > { %505 = vrot.lane.b32.xlu1 %v1362_v2, %s1288_s27  ;;  %503 = vrot.lane.b32.xlu0 %v1350_v0, %s1288_s27 }
  0x24   : > { %540 = vrot.lane.b32.xlu2 %v1353_v1, %s1289_s28 }
  0x2b   : > { %544 = vrot.lane.b32.xlu1 %v1350_v0, %s1289_s28  ;;  %542 = vrot.lane.b32.xlu0 %v1365_v3, %s1289_s28 }
  0x2c   : > { %546 = vrot.lane.b32.xlu2 %v1362_v2, %s1289_s28 }
  0x33   : > { %555 = vrot.lane.b32.xlu1 %v1365_v3, %s1290_s29  ;;  %553 = vrot.lane.b32.xlu0 %v1353_v1, %s1290_s29 }
  0x34   : > { %557 = vrot.lane.b32.xlu2 %v1350_v0, %s1290_s29 }
  0x3b   : > { %681 = vrot.lane.b32.xlu1 %v1392_v4, %s1289_s28  ;;  %559 = vrot.lane.b32.xlu0 %v1362_v2, %s1290_s29 }
  0x3c   : > { %683 = vrot.lane.b32.xlu2 %v1399_v5, %s1289_s28 }
  0x43   : > { %687 = vrot.lane.b32.xlu1 %v1404_v6, %s1289_s28  ;;  %685 = vrot.lane.b32.xlu0 %v1407_v7, %s1289_s28 }
  0x44   : > { %693 = vrot.lane.b32.xlu2 %v1392_v4, %s1290_s29 }
  0x4b   : > { %697 = vrot.lane.b32.xlu1 %v1407_v7, %s1290_s29  ;;  %695 = vrot.lane.b32.xlu0 %v1399_v5, %s1290_s29 }
  0x4c   : > { %699 = vrot.lane.b32.xlu2 %v1404_v6, %s1290_s29 }
  0x53   : > { %772 = vrot.lane.b32.xlu1 %v1422_v8, %s1287_s26  ;;  %770 = vrot.lane.b32.xlu0 %v1425_v9, %s1287_s26 }
  0x54   : > { %774 = vrot.lane.b32.xlu2 %v1432_v10, %s1287_s26 }
  0x5b   : > { %782 = vrot.lane.b32.xlu1 %v1425_v9, %s1288_s27  ;;  %776 = vrot.lane.b32.xlu0 %v1437_v11, %s1287_s26 }
  0x5c   : > { %784 = vrot.lane.b32.xlu2 %v1422_v8, %s1288_s27 }
  0x63   : > { %788 = vrot.lane.b32.xlu1 %v1437_v11, %s1288_s27  ;;  %786 = vrot.lane.b32.xlu0 %v1432_v10, %s1288_s27 }
  0x64   : > { %641 = vrot.lane.b32.xlu2 %v1392_v4, %s1287_s26 }
  0x6b   : > { %645 = vrot.lane.b32.xlu1 %v1407_v7, %s1287_s26  ;;  %643 = vrot.lane.b32.xlu0 %v1399_v5, %s1287_s26 }
  0x6c   : > { %647 = vrot.lane.b32.xlu2 %v1404_v6, %s1287_s26 }
  0x6e   : > { %v1457_v12 = vpop.permute.xlu2 %499 }
  0x73   : > { %655 = vrot.lane.b32.xlu1 %v1399_v5, %s1288_s27  ;;  %653 = vrot.lane.b32.xlu0 %v1392_v4, %s1288_s27 }
  0x74   : > { %657 = vrot.lane.b32.xlu2 %v1407_v7, %s1288_s27 }
  0x76   : > { %v1465_v13 = vpop.permute.xlu2 %501 }
  0x7b   : > { %810 = vrot.lane.b32.xlu1 %v1425_v9, %s1289_s28  ;;  %659 = vrot.lane.b32.xlu0 %v1404_v6, %s1288_s27 }
  0x7c   : > { %812 = vrot.lane.b32.xlu2 %v1422_v8, %s1289_s28 }
  0x7e   : > { %v1482_v17 = vpop.permute.xlu2 %540 }
  0x83   : > { %816 = vrot.lane.b32.xlu1 %v1437_v11, %s1289_s28  ;;  %814 = vrot.lane.b32.xlu0 %v1432_v10, %s1289_s28  ;;  %s1222_s28 = sshll.u32 %s2216_s18, 4 }
  0x84   : > { %822 = vrot.lane.b32.xlu2 %v1425_v9, %s1290_s29  ;;  %s393_s6 = scalar_lea.vmem %s2178_s5, %s1222_s28 }
  0x85   : > { %v489_v24 = vpop.permute.xlu1 %488  ;;  %v485_v25 = vpop.permute.xlu0 %484 }
  0x86   : > { %v1508_v26 = vsel %vm494_vm2, %v485_v25, %v489_v24  ;;  %v1512_v27 = vsel %vm494_vm2, %v489_v24, %v485_v25  ;;  %v1518_v30 = vpop.permute.xlu2 %546  ;;  %v1597_v24 = vsel %vm456_vm6, %v615_v48, %v617_v50  ;;  %v1601_v25 = vsel %vm456_vm6, %v616_v49, %v618_v51 }
  0x87   : > { %v518_v46 = vsel %vm1522_vm3, %v1353_v1, %v1508_v26  ;;  %v519_v47 = vsel %vm1526_vm4, %v1350_v0, %v1512_v27  ;;  %v629_v48 = vsel %vm406_vm10, %v627_v61, %v621_v14  ;;  %v630_v49 = vsel %vm406_vm10, %v628_v62, %v622_v16 }
  0x8b   : > { %826 = vrot.lane.b32.xlu1 %v1432_v10, %s1290_s29  ;;  %824 = vrot.lane.b32.xlu0 %v1422_v8, %s1290_s29 }
  0x8c   : > { %828 = vrot.lane.b32.xlu2 %v1437_v11, %s1290_s29 }
  0x8d   : > { %v491_v52 = vpop.permute.xlu1 %490  ;;  %v487_v53 = vpop.permute.xlu0 %486 }
  0x8e   : > { %v496_v57 = vsel %vm494_vm2, %v487_v53, %v491_v52  ;;  %v498_v58 = vsel %vm494_vm2, %v491_v52, %v487_v53  ;;  %v1571_v60 = vpop.permute.xlu2 %557  ;;  %v752_v52 = vperm.slane %v1535_v36, 2  ;;  %v753_v53 = vperm.slane %v1535_v36, 6 }
  0x8f   : > { %v520_v26 = vsel %vm1522_vm3, %v1365_v3, %v496_v57  ;;  %v521_v27 = vsel %vm1526_vm4, %v1362_v2, %v498_v58 }
  0x90   : > { %v756_v42 = vperm.slane %v752_v52, 2  ;;  %v757_v37 = vperm.slane %v753_v53, 2 }
  0x95   : > { %v506_v50 = vpop.permute.xlu1 %505  ;;  %v504_v51 = vpop.permute.xlu0 %503 }
  0x96   : > { %v509_v54 = vsel %vm507_vm8, %v1465_v13, %v506_v50  ;;  %v511_v55 = vsel %vm507_vm8, %v506_v50, %v1465_v13  ;;  %v508_v56 = vsel %vm507_vm8, %v1457_v12, %v504_v51  ;;  %v510_v57 = vsel %vm507_vm8, %v504_v51, %v1457_v12  ;;  %v1647_v58 = vpop.permute.xlu2 %683 }
  0x97   : > { %v528_v59 = vsel %vm1574_vm9, %v1365_v3, %v511_v55  ;;  %v529_v61 = vsel %vm1583_vm11, %v1362_v2, %v509_v54  ;;  %v526_v13 = vsel %vm1574_vm9, %v1353_v1, %v510_v57  ;;  %v527_v62 = vsel %vm1583_vm11, %v1350_v0, %v508_v56 }
  0x98   : > { %v1661_v14 = vsub.f32 %v520_v26, %v528_v59  ;;  %v1663_v12 = vsub.f32 %v521_v27, %v529_v61  ;;  %v530_v16 = vsub.f32 %v518_v46, %v526_v13  ;;  %v531_v50 = vsub.f32 %v519_v47, %v527_v62 }
  0x99   : > { %v633_v51 = vsub.f32 %v601_v44, %v629_v48  ;;  %v634_v55 = vsub.f32 %v602_v45, %v630_v49  ;;  %v727_v54 = vrot.slane %v1432_v10, 1  ;;  %v729_v57 = vrot.slane %v1437_v11, 1 }
  0x9a   : > { %v1671_v26 = vsel %vm409_vm7, 1.0, %v1292_v39  ;;  %v635_v46 = vsub.f32 %v1589_v22, %v1597_v24  ;;  %v2193_v44 = vrot.slane %v1425_v9, 7  ;;  %v2194_v45 = vrot.slane %v1422_v8, 7 }
  0x9b   : > { %v2195_v48 = vrot.slane %v1432_v10, 7  ;;  %v2196_v49 = vrot.slane %v1437_v11, 7  ;;  %v636_v39 = vsub.f32 %v1593_v23, %v1601_v25  ;;  %v734_v22 = vperm.slane %v1516_v29, 2 }
  0x9c   : > { %v750_v47 = vsel %vm456_vm6, %v2194_v45, %v2193_v44  ;;  %v735_v24 = vperm.slane %v1516_v29, 6  ;;  %v637_v52 = vmul.f32 %v633_v51, %v1605_v40  ;;  %v638_v53 = vmul.f32 %v634_v55, %v1605_v40 }
  0x9d   : > { %v751_v27 = vsel %vm456_vm6, %v2196_v49, %v2195_v48  ;;  %v566_v56 = vperm.slane %v1487_v20, 2  ;;  %v567_v59 = vperm.slane %v1489_v21, 2  ;;  %v545_v61 = vpop.permute.xlu1 %544  ;;  %v543_v13 = vpop.permute.xlu0 %542  ;;  %v730_v62 = vsel %vm432_vm5, %v726_v43, %v728_v38 }
  0x9e   : > { %v731_v23 = vsel %vm432_vm5, %v727_v54, %v729_v57  ;;  %v758_v25 = vsel %vm406_vm10, %v756_v42, %v750_v47  ;;  %v759_v51 = vsel %vm406_vm10, %v757_v37, %v751_v27  ;;  %v549_v55 = vsel %vm548_vm12, %v1482_v17, %v545_v61  ;;  %v1722_v27 = vpop.permute.xlu2 %693 }
  0x9f   : > { %v551_v44 = vsel %vm548_vm12, %v545_v61, %v1482_v17  ;;  %v1713_v45 = vsel %vm548_vm12, %v543_v13, %v1518_v30  ;;  %v1718_v42 = vsel %vm548_vm12, %v1518_v30, %v543_v13  ;;  %v574_v37 = vperm.slane %v1487_v20, 3 }
  0xa0   : > { %v575_v47 = vperm.slane %v1489_v21, 3  ;;  %v738_v48 = vperm.slane %v734_v22, 2  ;;  %v739_v49 = vperm.slane %v735_v24, 2  ;;  %v536_v17 = vmul.f32 %v1520_v31, %v530_v16 }
  0xa1   : > { %v537_v61 = vmul.f32 %v1531_v34, %v531_v50  ;;  %v732_v29 = vsel %vm432_vm5, %v728_v38, %v726_v43  ;;  %v733_v36 = vsel %vm432_vm5, %v729_v57, %v727_v54  ;;  %v1731_v30 = vperm.slane %v1477_v15, 0 }
  0xa2   : > { %v639_v20 = vmul.f32 %v635_v46, %v1671_v26  ;;  %v762_v21 = vsub.f32 %v730_v62, %v758_v25  ;;  %v763_v22 = vsub.f32 %v731_v23, %v759_v51  ;;  %v640_v24 = vmul.f32 %v636_v39, %v1671_v26 }
  0xa3   : > { %vm1735_vm13 = vcmp.eq.s32.totalorder %v566_v56, 1  ;;  %vm1739_vm14 = vcmp.eq.s32.totalorder %v567_v59, 1  ;;  %vm1744_vm0 = vcmp.eq.s32.totalorder %v574_v37, 1  ;;  %vm1748_vm1 = vcmp.eq.s32.totalorder %v575_v47, 1 }
  0xa4   : > { %v742_v43 = vsel %vm409_vm7, %v738_v48, %v732_v29  ;;  %v743_v50 = vsel %vm409_vm7, %v739_v49, %v733_v36  ;;  %v850_v54 = vadd.f32 %v637_v52, %v536_v17  ;;  %v851_v57 = vadd.f32 %v638_v53, %v537_v61 }
  0xa5   : > { %v556_v46 = vpop.permute.xlu1 %555  ;;  %v554_v39 = vpop.permute.xlu0 %553  ;;  %v2205_v56 = vrot.slane %v1422_v8, 7  ;;  %v2206_v59 = vrot.slane %v1425_v9, 7  ;;  %v2207_v23 = vrot.slane %v1437_v11, 7  ;;  %v2208_v25 = vrot.slane %v1432_v10, 7 }
  0xa6   : > { %v766_v36 = vmul.f32 %v762_v21, %v1605_v40  ;;  %v767_v52 = vmul.f32 %v763_v22, %v1605_v40  ;;  %v562_v53 = vsel %vm561_vm15, %v554_v39, %v1571_v60  ;;  %v564_v51 = vsel %vm561_vm15, %v1571_v60, %v554_v39 }
  0xa7   : > { %v748_v62 = vsel %vm456_vm6, %v2206_v59, %v2205_v56  ;;  %v749_v29 = vsel %vm456_vm6, %v2208_v25, %v2207_v23  ;;  %v570_v37 = vsel %vm1735_vm13, %v1353_v1, %v549_v55  ;;  %v571_v47 = vsel %vm1739_vm14, %v1350_v0, %v551_v44  ;;  %v1794_v23 = vpop.permute.xlu2 %699 }
  0xa8   : > { %v578_v48 = vsel %vm1744_vm0, %v1353_v1, %v564_v51  ;;  %v579_v49 = vsel %vm1748_vm1, %v1350_v0, %v562_v53  ;;  %v764_v21 = vsub.f32 %v742_v43, %v748_v62  ;;  %v765_v60 = vsub.f32 %v743_v50, %v749_v29 }
  0xa9   : > { %v582_v17 = vsub.f32 %v570_v37, %v578_v48  ;;  %v583_v61 = vsub.f32 %v571_v47, %v579_v49  ;;  %v538_v22 = vmul.f32 %v1520_v31, %v1661_v14  ;;  %v539_v55 = vmul.f32 %v1531_v34, %v1663_v12 }
  0xaa   : > { %v854_v39 = vmul.f32 0.5, %v850_v54  ;;  %v855_v44 = vmul.f32 0.5, %v851_v57  ;;  %v768_v51 = vmul.f32 %v764_v21, %v1671_v26  ;;  %v769_v43 = vmul.f32 %v765_v60, %v1671_v26 }
  0xab   : > { %v588_v56 = vmul.f32 %v1533_v35, %v582_v17  ;;  %v589_v59 = vmul.f32 %v1731_v30, %v583_v61  ;;  %v852_v50 = vadd.f32 %v639_v20, %v538_v22  ;;  %v853_v62 = vadd.f32 %v640_v24, %v539_v55 }
  0xac   : > { %v902_v14 = vmul.f32 %v854_v39, %v854_v39  ;;  %v903_v29 = vmul.f32 %v855_v44, %v855_v44  ;;  %v573_v20 = vsel %vm1739_vm14, %v1362_v2, %v1718_v42 }
  0xad   : > { %v858_v25 = vadd.f32 %v766_v36, %v588_v56  ;;  %v859_v53 = vadd.f32 %v767_v52, %v589_v59  ;;  %v682_v37 = vpop.permute.xlu1 %681  ;;  %v560_v12 = vpop.permute.xlu0 %559  ;;  %v572_v36 = vsel %vm1735_vm13, %v1365_v3, %v1713_v45  ;;  %v856_v22 = vmul.f32 0.5, %v852_v50 }
  0xae   : > { %v563_v47 = vsel %vm561_vm15, %v556_v46, %v560_v12  ;;  %v565_v48 = vsel %vm561_vm15, %v560_v12, %v556_v46  ;;  %v857_v55 = vmul.f32 0.5, %v853_v62 }
  0xaf   : > { %v862_v54 = vmul.f32 0.5, %v858_v25  ;;  %v863_v57 = vmul.f32 0.5, %v859_v53  ;;  %v580_v24 = vsel %vm1744_vm0, %v1365_v3, %v565_v48  ;;  %v581_v52 = vsel %vm1748_vm1, %v1362_v2, %v563_v47  ;;  %v775_v56 = vpop.permute.xlu2 %774 }
  0xb0   : > { %v584_v17 = vsub.f32 %v572_v36, %v580_v24  ;;  %v585_v61 = vsub.f32 %v573_v20, %v581_v52  ;;  %v905_v50 = vmul.f32 %v857_v55, %v857_v55 }
  0xb1   : > { %v906_v49 = vmul.f32 %v862_v54, %v862_v54  ;;  %v907_v46 = vmul.f32 %v863_v57, %v863_v57 }
  0xb2   : > { %v590_v60 = vmul.f32 %v1533_v35, %v584_v17  ;;  %v591_v42 = vmul.f32 %v1731_v30, %v585_v61 }
  0xb3   : > { %v1816_v21 = vadd.f32 %v906_v49, %v902_v14  ;;  %v1818_v45 = vadd.f32 %v907_v46, %v903_v29 }
  0xb4   : > { %v860_v39 = vadd.f32 %v768_v51, %v590_v60  ;;  %v861_v44 = vadd.f32 %v769_v43, %v591_v42  ;;  %v904_v43 = vmul.f32 %v856_v22, %v856_v22 }
  0xb5   : > { %v688_v59 = vpop.permute.xlu1 %687  ;;  %v686_v25 = vpop.permute.xlu0 %685 }
  0xb6   : > { %v864_v53 = vmul.f32 0.5, %v860_v39  ;;  %v865_v12 = vmul.f32 0.5, %v861_v44  ;;  %v690_v14 = vsel %vm548_vm12, %v1647_v58, %v688_v59  ;;  %v692_v29 = vsel %vm548_vm12, %v688_v59, %v1647_v58 }
  0xb7   : > { %v689_v54 = vsel %vm548_vm12, %v682_v37, %v686_v25  ;;  %v691_v51 = vsel %vm548_vm12, %v686_v25, %v682_v37  ;;  %v785_v52 = vpop.permute.xlu2 %784 }
  0xb8   : > { %v908_v62 = vmul.f32 %v864_v53, %v864_v53  ;;  %v909_v57 = vmul.f32 %v865_v12, %v865_v12  ;;  %v705_v37 = vsel %vm1735_vm13, %v1392_v4, %v689_v54  ;;  %v706_v49 = vsel %vm1739_vm14, %v1407_v7, %v691_v51 }
  0xba   : > { %v1832_v47 = vadd.f32 %v908_v62, %v904_v43  ;;  %v1834_v48 = vadd.f32 %v909_v57, %v905_v50  ;;  %v707_v50 = vsel %vm1735_vm13, %v1399_v5, %v690_v14  ;;  %v708_v62 = vsel %vm1739_vm14, %v1404_v6, %v692_v29 }
  0xbd   : > { %v698_v36 = vpop.permute.xlu1 %697  ;;  %v696_v20 = vpop.permute.xlu0 %695 }
  0xbe   : > { %v701_v58 = vsel %vm561_vm15, %v1722_v27, %v698_v36  ;;  %v703_v24 = vsel %vm561_vm15, %v698_v36, %v1722_v27  ;;  %v702_v44 = vsel %vm561_vm15, %v696_v20, %v1794_v23  ;;  %v704_v59 = vsel %vm561_vm15, %v1794_v23, %v696_v20 }
  0xbf   : > { %v709_v46 = vsel %vm1744_vm0, %v1392_v4, %v703_v24  ;;  %v710_v17 = vsel %vm1748_vm1, %v1407_v7, %v701_v58  ;;  %v1854_v22 = vpop.permute.xlu2 %641  ;;  %v711_v25 = vsel %vm1744_vm0, %v1399_v5, %v704_v59  ;;  %v712_v53 = vsel %vm1748_vm1, %v1404_v6, %v702_v44 }
  0xc0   : > { %v713_v61 = vsub.f32 %v705_v37, %v709_v46  ;;  %v714_v60 = vsub.f32 %v706_v49, %v710_v17  ;;  %v715_v57 = vsub.f32 %v707_v50, %v711_v25  ;;  %v716_v36 = vsub.f32 %v708_v62, %v712_v53 }
  0xc2   : > { %v717_v53 = vmul.f32 %v713_v61, %v1533_v35 }
  0xc5   : > { %v773_v27 = vpop.permute.xlu1 %772  ;;  %v771_v42 = vpop.permute.xlu0 %770 }
  0xc6   : > { %v778_v12 = vsel %vm494_vm2, %v771_v42, %v775_v56  ;;  %v780_v54 = vsel %vm494_vm2, %v775_v56, %v771_v42 }
  0xc7   : > { %v1876_v43 = vpop.permute.xlu2 %647  ;;  %v794_v56 = vsel %vm1522_vm3, %v1425_v9, %v778_v12  ;;  %v795_v20 = vsel %vm1526_vm4, %v1432_v10, %v780_v54  ;;  %v718_v12 = vmul.f32 %v714_v60, %v1731_v30  ;;  %v719_v54 = vmul.f32 %v715_v57, %v1533_v35 }
  0xcd   : > { %v783_v55 = vpop.permute.xlu1 %782  ;;  %v777_v39 = vpop.permute.xlu0 %776 }
  0xce   : > { %v779_v51 = vsel %vm494_vm2, %v773_v27, %v777_v39  ;;  %v781_v23 = vsel %vm494_vm2, %v777_v39, %v773_v27 }
  0xcf   : > { %v796_v58 = vsel %vm1522_vm3, %v1422_v8, %v779_v51  ;;  %v797_v14 = vsel %vm1526_vm4, %v1437_v11, %v781_v23  ;;  %v720_v51 = vmul.f32 %v716_v36, %v1731_v30 }
  0xd5   : > { %v789_v24 = vpop.permute.xlu1 %788  ;;  %v787_v29 = vpop.permute.xlu0 %786 }
  0xd6   : > { %v791_v37 = vsel %vm507_vm8, %v785_v52, %v789_v24  ;;  %v793_v49 = vsel %vm507_vm8, %v789_v24, %v785_v52  ;;  %v790_v46 = vsel %vm507_vm8, %v783_v55, %v787_v29  ;;  %v792_v17 = vsel %vm507_vm8, %v787_v29, %v783_v55  ;;  %v658_v29 = vpop.permute.xlu2 %657 }
  0xd7   : > { %v800_v27 = vsel %vm1574_vm9, %v1422_v8, %v793_v49  ;;  %v801_v42 = vsel %vm1583_vm11, %v1437_v11, %v791_v37  ;;  %v798_v39 = vsel %vm1574_vm9, %v1425_v9, %v792_v17  ;;  %v799_v52 = vsel %vm1583_vm11, %v1432_v10, %v790_v46 }
  0xd8   : > { %v804_v44 = vsub.f32 %v796_v58, %v800_v27  ;;  %v805_v59 = vsub.f32 %v797_v14, %v801_v42  ;;  %v802_v25 = vsub.f32 %v794_v56, %v798_v39  ;;  %v803_v55 = vsub.f32 %v795_v20, %v799_v52 }
  0xda   : > { %v808_v23 = vmul.f32 %v804_v44, %v1520_v31  ;;  %v809_v50 = vmul.f32 %v805_v59, %v1531_v34  ;;  %v806_v62 = vmul.f32 %v802_v25, %v1520_v31  ;;  %v807_v24 = vmul.f32 %v803_v55, %v1531_v34  ;;  %v2209_v55 = vld [vmem:[#allocation3_spill] sm:$0xff] }
  0xdc   : > { %v868_v58 = vadd.f32 %v808_v23, %v719_v54  ;;  %v869_v14 = vadd.f32 %v809_v50, %v720_v51  ;;  %v866_v56 = vadd.f32 %v806_v62, %v717_v53  ;;  %v867_v20 = vadd.f32 %v807_v24, %v718_v12 }
  0xdd   : > { %v646_v61 = vpop.permute.xlu1 %645  ;;  %v644_v37 = vpop.permute.xlu0 %643  ;;  %v466_v53 = vperm.slane %v2209_v55, 0  ;;  %v454_v54 = vrot.slane %v1365_v3, 7  ;;  %v467_v51 = vperm.slane %v2209_v55, 4  ;;  %v453_v23 = vrot.slane %v1350_v0, 7 }
  0xde   : > { %v872_v60 = vmul.f32 0.5, %v868_v58  ;;  %v873_v49 = vmul.f32 0.5, %v869_v14  ;;  %v870_v57 = vmul.f32 0.5, %v866_v56  ;;  %v871_v46 = vmul.f32 0.5, %v867_v20  ;;  %v813_v50 = vpop.permute.xlu2 %812  ;;  %v2210_v20 = vld [vmem:[#allocation2_spill] sm:$0xff] }
  0xdf   : > { %v431_v62 = vrot.slane %v1362_v2, 1  ;;  %v470_v24 = vperm.slane %v466_v53, 0  ;;  %v428_v58 = vrot.slane %v1353_v1, 1  ;;  %v471_v14 = vperm.slane %v467_v51, 0 }
  0xe0   : > { %v916_v36 = vmul.f32 %v872_v60, %v872_v60  ;;  %v917_v17 = vmul.f32 %v873_v49, %v873_v49  ;;  %v914_v27 = vmul.f32 %v870_v57, %v870_v57  ;;  %v915_v42 = vmul.f32 %v871_v46, %v871_v46 }
  0xe1   : > { %v442_v60 = vperm.slane %v2210_v20, 0  ;;  %v443_v57 = vperm.slane %v2210_v20, 4  ;;  %v649_v51 = vsel %vm494_vm2, %v1854_v22, %v646_v61 }
  0xe2   : > { %v1925_v39 = vadd.f32 %v916_v36, %v1832_v47  ;;  %v1928_v52 = vadd.f32 %v917_v17, %v1834_v48  ;;  %v1931_v44 = vadd.f32 %v914_v27, %v1816_v21  ;;  %v1934_v59 = vadd.f32 %v915_v42, %v1818_v45 }
  0xe3   : > { %v452_v47 = vrot.slane %v1353_v1, 7  ;;  %v455_v48 = vrot.slane %v1362_v2, 7  ;;  %v429_v21 = vrot.slane %v1350_v0, 1  ;;  %v430_v45 = vrot.slane %v1365_v3, 1 }
  0xe4   : > { %v446_v42 = vperm.slane %v442_v60, 0  ;;  %v447_v55 = vperm.slane %v443_v57, 0 }
  0xe5   : > { %v656_v25 = vpop.permute.xlu1 %655  ;;  %v654_v12 = vpop.permute.xlu0 %653  ;;  %v459_v56 = vsel %vm456_vm6, %v454_v54, %v452_v47  ;;  %v460_v49 = vsel %vm456_vm6, %v455_v48, %v453_v23  ;;  %v434_v0 = vsel %vm432_vm5, %v429_v21, %v431_v62  ;;  %v433_v2 = vsel %vm432_vm5, %v428_v58, %v430_v45 }
  0xe6   : > { %v472_v1 = vsel %vm406_vm10, %v470_v24, %v459_v56  ;;  %v473_v36 = vsel %vm406_vm10, %v471_v14, %v460_v49  ;;  %v661_v17 = vsel %vm507_vm8, %v654_v12, %v658_v29  ;;  %v663_v27 = vsel %vm507_vm8, %v658_v29, %v654_v12 }
  0xe7   : > { %v435_v53 = vsel %vm432_vm5, %v430_v45, %v428_v58  ;;  %v651_v24 = vsel %vm494_vm2, %v646_v61, %v1854_v22  ;;  %v436_v14 = vsel %vm432_vm5, %v431_v62, %v429_v21  ;;  %v477_v56 = vsub.f32 %v434_v0, %v473_v36  ;;  %v823_v45 = vpop.permute.xlu2 %822 }
  0xe8   : > { %v476_v20 = vsub.f32 %v433_v2, %v472_v1  ;;  %v669_v29 = vsel %vm1574_vm9, %v1392_v4, %v663_v27  ;;  %v670_v12 = vsel %vm1583_vm11, %v1407_v7, %v661_v17  ;;  %v458_v58 = vsel %vm456_vm6, %v453_v23, %v455_v48 }
  0xe9   : > { %v450_v22 = vsel %vm409_vm7, %v446_v42, %v435_v53  ;;  %v665_v62 = vsel %vm1522_vm3, %v1392_v4, %v649_v51  ;;  %v666_v60 = vsel %vm1526_vm4, %v1407_v7, %v651_v24  ;;  %v451_v23 = vsel %vm409_vm7, %v447_v55, %v436_v14 }
  0xea   : > { %v457_v48 = vsel %vm456_vm6, %v452_v47, %v454_v54  ;;  %v650_v49 = vsel %vm494_vm2, %v644_v37, %v1876_v43  ;;  %v673_v57 = vsub.f32 %v665_v62, %v669_v29  ;;  %v674_v4 = vsub.f32 %v666_v60, %v670_v12 }
  0xeb   : > { %v2011_v47 = vmul.f32 %v477_v56, %v1605_v40  ;;  %v2014_v0 = vmul.f32 %v476_v20, %v1605_v40  ;;  %v478_v2 = vsub.f32 %v450_v22, %v457_v48 }
  0xec   : > { %v2023_v19 = vmul.f32 %v673_v57, %v1520_v31  ;;  %v2026_v1 = vmul.f32 %v674_v4, %v1531_v34 }
  0xed   : > { %v811_v3 = vpop.permute.xlu1 %810  ;;  %v660_v46 = vpop.permute.xlu0 %659  ;;  %v883_v33 = vmul.f32 %v2011_v47, %v2011_v47  ;;  %v882_v17 = vmul.f32 %v2014_v0, %v2014_v0  ;;  %v2044_v42 = vmul.f32 %v478_v2, %v1671_v26  ;;  %v924_v2 = vmul.f32 2.0, %v1925_v39 }
  0xee   : > { %v662_v61 = vsel %vm507_vm8, %v656_v25, %v660_v46  ;;  %v664_v21 = vsel %vm507_vm8, %v660_v46, %v656_v25  ;;  %v652_v25 = vsel %vm494_vm2, %v1876_v43, %v644_v37  ;;  %v667_v43 = vsel %vm1522_vm3, %v1399_v5, %v650_v49 }
  0xef   : > { %v671_v7 = vsel %vm1574_vm9, %v1399_v5, %v664_v21  ;;  %v672_v41 = vsel %vm1583_vm11, %v1404_v6, %v662_v61  ;;  %v668_v63 = vsel %vm1526_vm4, %v1404_v6, %v652_v25  ;;  %v479_v37 = vsub.f32 %v451_v23, %v458_v58  ;;  %v829_v55 = vpop.permute.xlu2 %828 }
  0xf0   : > { %v675_v46 = vsub.f32 %v667_v43, %v671_v7  ;;  %v676_v36 = vsub.f32 %v668_v63, %v672_v41  ;;  %v887_v53 = vmul.f32 %v2026_v1, %v2026_v1  ;;  %v923_v43 = vmul.f32 2.0, %v1934_v59 }
  0xf1   : > { %v2041_v27 = vmul.f32 %v479_v37, %v1671_v26 }
  0xf2   : > { %v680_v51 = vmul.f32 %v676_v36, %v1531_v34  ;;  %v891_v49 = vadd.f32 %v887_v53, %v883_v33  ;;  %v875_v33 = vadd.f32 %v2026_v1, %v2011_v47 }
  0xf3   : > { %v885_v60 = vmul.f32 %v2041_v27, %v2041_v27 }
  0xf4   : > { %v877_v53 = vadd.f32 %v680_v51, %v2041_v27 }
  0xf5   : > { %v817_v28 = vpop.permute.xlu1 %816  ;;  %v815_v54 = vpop.permute.xlu0 %814 }
  0xf6   : > { %v819_v40 = vsel %vm548_vm12, %v813_v50, %v817_v28  ;;  %v821_v5 = vsel %vm548_vm12, %v817_v28, %v813_v50  ;;  %v818_v32 = vsel %vm548_vm12, %v811_v3, %v815_v54  ;;  %v820_v6 = vsel %vm548_vm12, %v815_v54, %v811_v3 }
  0xf7   : > { %v886_v50 = vmul.f32 %v2023_v19, %v2023_v19  ;;  %v679_v3 = vmul.f32 %v675_v46, %v1520_v31  ;;  %v836_v24 = vsel %vm1735_vm13, %v1422_v8, %v819_v40  ;;  %v837_v26 = vsel %vm1739_vm14, %v1437_v11, %v821_v5 }
  0xf8   : > { %v834_v14 = vsel %vm1735_vm13, %v1425_v9, %v818_v32  ;;  %v835_v56 = vsel %vm1739_vm14, %v1432_v10, %v820_v6  ;;  %v922_v54 = vmul.f32 2.0, %v1931_v44  ;;  %v874_v6 = vadd.f32 %v2023_v19, %v2014_v0 }
  0xf9   : > { %v888_v23 = vmul.f32 %v679_v3, %v679_v3  ;;  %v890_v15 = vadd.f32 %v886_v50, %v882_v17  ;;  %v876_v50 = vadd.f32 %v679_v3, %v2044_v42 }
  0xfd   : > { %v827_v20 = vpop.permute.xlu1 %826  ;;  %v825_v31 = vpop.permute.xlu0 %824 }
  0xfe   : > { %v830_v34 = vsel %vm561_vm15, %v823_v45, %v827_v20  ;;  %v832_v29 = vsel %vm561_vm15, %v827_v20, %v823_v45  ;;  %v831_v12 = vsel %vm561_vm15, %v825_v31, %v829_v55  ;;  %v833_v58 = vsel %vm561_vm15, %v829_v55, %v825_v31 }
  0xff   : > { %v838_v13 = vsel %vm1744_vm0, %v1425_v9, %v832_v29  ;;  %v839_v16 = vsel %vm1748_vm1, %v1432_v10, %v830_v34  ;;  %v840_v22 = vsel %vm1744_vm0, %v1422_v8, %v833_v58  ;;  %v841_v45 = vsel %vm1748_vm1, %v1437_v11, %v831_v12 }
 0x100   : > { %v842_v61 = vsub.f32 %v834_v14, %v838_v13  ;;  %v843_v21 = vsub.f32 %v835_v56, %v839_v16  ;;  %v844_v18 = vsub.f32 %v836_v24, %v840_v22  ;;  %v845_v62 = vsub.f32 %v837_v26, %v841_v45 }
 0x101   : > { %v884_v9 = vmul.f32 %v2044_v42, %v2044_v42  ;;  %v889_v10 = vmul.f32 %v680_v51, %v680_v51 }
 0x102   : > { %v846_v48 = vmul.f32 %v842_v61, %v1533_v35  ;;  %v847_v8 = vmul.f32 %v843_v21, %v1731_v30  ;;  %v848_v38 = vmul.f32 %v844_v18, %v1533_v35  ;;  %v849_v11 = vmul.f32 %v845_v62, %v1731_v30 }
 0x103   : > { %v892_v4 = vadd.f32 %v888_v23, %v884_v9  ;;  %v893_v7 = vadd.f32 %v889_v10, %v885_v60  ;;  %v925_v35 = vmul.f32 2.0, %v1928_v52 }
 0x104   : > { %v894_v25 = vmul.f32 %v846_v48, %v846_v48  ;;  %v895_v57 = vmul.f32 %v847_v8, %v847_v8  ;;  %v896_v41 = vmul.f32 %v848_v38, %v848_v38  ;;  %v897_v28 = vmul.f32 %v849_v11, %v849_v11 }
 0x105   : > { %v878_v14 = vadd.f32 %v874_v6, %v846_v48  ;;  %v879_v56 = vadd.f32 %v875_v33, %v847_v8  ;;  %v880_v0 = vadd.f32 %v876_v50, %v848_v38  ;;  %v881_v19 = vadd.f32 %v877_v53, %v849_v11 }
 0x106   : > { %v898_v63 = vadd.f32 %v894_v25, %v890_v15  ;;  %v899_v37 = vadd.f32 %v895_v57, %v891_v49  ;;  %v900_v46 = vadd.f32 %v896_v41, %v892_v4  ;;  %v901_v30 = vadd.f32 %v897_v28, %v893_v7 }
 0x107   : > { %v990_v42 = vmul.f32 %v878_v14, %v878_v14  ;;  %v991_v3 = vmul.f32 %v879_v56, %v879_v56  ;;  %v2118_v22 = vmul.f32 %v880_v0, %v880_v0  ;;  %v2120_v45 = vmul.f32 %v881_v19, %v881_v19 }
 0x108   : > { %v2096_v36 = vadd.f32 %v922_v54, %v898_v63  ;;  %v2098_v40 = vadd.f32 %v923_v43, %v899_v37  ;;  %v2100_v5 = vadd.f32 %v924_v2, %v900_v46  ;;  %v2102_v32 = vadd.f32 %v925_v35, %v901_v30 }
 0x10a   : > { %1255 = vrsqrt.f32 %v2096_v36  ;;  %vm937_vm2 = vcmp.eq.f32.partialorder %v2096_v36, inf  ;;  %vm939_vm3 = vcmp.eq.f32.partialorder %v2096_v36, 0.0  ;;  %v940_v62 = vand.u32 2147483648, %v2096_v36 }
 0x10b   : > { %1257 = vrsqrt.f32 %v2098_v40  ;;  %vm949_vm4 = vcmp.eq.f32.partialorder %v2098_v40, inf  ;;  %vm951_vm5 = vcmp.eq.f32.partialorder %v2098_v40, 0.0  ;;  %v952_v23 = vand.u32 2147483648, %v2098_v40 }
 0x10c   : > { %1259 = vrsqrt.f32 %v2100_v5  ;;  %vm961_vm6 = vcmp.eq.f32.partialorder %v2100_v5, inf  ;;  %vm963_vm7 = vcmp.eq.f32.partialorder %v2100_v5, 0.0  ;;  %v964_v15 = vand.u32 2147483648, %v2100_v5 }
 0x10d   : > { %1261 = vrsqrt.f32 %v2102_v32  ;;  %vm973_vm8 = vcmp.eq.f32.partialorder %v2102_v32, inf  ;;  %v976_v2 = vand.u32 2147483648, %v2102_v32  ;;  %vm975_vm9 = vcmp.eq.f32.partialorder %v2102_v32, 0.0 }
 0x110   : > { %v1256_v39 = vpop.eup %1255 }
 0x111   : > { %v1258_v52 = vpop.eup %1257  ;;  %v931_v44 = vmul.f32 %v1256_v39, %v2096_v36 }
 0x112   : > { %v1260_v59 = vpop.eup %1259  ;;  %v943_v17 = vmul.f32 %v1258_v52, %v2098_v40 }
 0x113   : > { %v1262_v55 = vpop.eup %1261  ;;  %v932_v24 = vmul.f32 %v1256_v39, %v931_v44  ;;  %v955_v26 = vmul.f32 %v1260_v59, %v2100_v5 }
 0x114   : > { %v944_v20 = vmul.f32 %v1258_v52, %v943_v17  ;;  %v967_v31 = vmul.f32 %v1262_v55, %v2102_v32 }
 0x115   : > { %v933_v34 = vmul.f32 0.5, %v932_v24  ;;  %v956_v29 = vmul.f32 %v1260_v59, %v955_v26 }
 0x116   : > { %v945_v47 = vmul.f32 0.5, %v944_v20  ;;  %v968_v1 = vmul.f32 %v1262_v55, %v967_v31 }
 0x117   : > { %v934_v12 = vsub.f32 1.5, %v933_v34  ;;  %v957_v58 = vmul.f32 0.5, %v956_v29 }
 0x118   : > { %v946_v13 = vsub.f32 1.5, %v945_v47  ;;  %v969_v27 = vmul.f32 0.5, %v968_v1 }
 0x119   : > { %v935_v51 = vmul.f32 %v1256_v39, %v934_v12  ;;  %v958_v16 = vsub.f32 1.5, %v957_v58 }
 0x11a   : > { %v947_v61 = vmul.f32 %v1258_v52, %v946_v13  ;;  %v970_v21 = vsub.f32 1.5, %v969_v27 }
 0x11b   : > { %v936_v18 = vmul.f32 %v935_v51, %v2096_v36  ;;  %v959_v60 = vmul.f32 %v1260_v59, %v958_v16  ;;  %v417_v16 = vld [vmem:[%s2176_s3 + $0x8] sm:$0xff] }
 0x11c   : > { %v948_v9 = vmul.f32 %v947_v61, %v2098_v40  ;;  %v971_v10 = vmul.f32 %v1262_v55, %v970_v21 }
 0x11d   : > { %v938_v48 = vsel %vm937_vm2, %v2096_v36, %v936_v18  ;;  %v960_v8 = vmul.f32 %v959_v60, %v2100_v5  ;;  %v419_v60 = vld [vmem:[%s2176_s3 + $0x18] sm:$0xff] }
 0x11e   : > { %v941_v38 = vsel %vm939_vm3, %v940_v62, %v938_v48  ;;  %v950_v11 = vsel %vm949_vm4, %v2098_v40, %v948_v9  ;;  %v972_v49 = vmul.f32 %v971_v10, %v2102_v32 }
 0x11f   : > { %v953_v25 = vsel %vm951_vm5, %v952_v23, %v950_v11  ;;  %v978_v57 = vmul.f32 0.1, %v941_v38  ;;  %v998_v4 = vmul.f32 0.05, %v941_v38  ;;  %v1014_v28 = vmul.f32 0.2, %v941_v38 }
 0x120   : > { %v979_v7 = vmul.f32 0.1, %v953_v25  ;;  %v999_v41 = vmul.f32 0.05, %v953_v25  ;;  %v962_v54 = vsel %vm961_vm6, %v2100_v5, %v960_v8  ;;  %v974_v30 = vsel %vm973_vm8, %v2102_v32, %v972_v49 }
 0x121   : > { %v982_v43 = vadd.f32 1.0, %v978_v57  ;;  %v1002_v63 = vadd.f32 0.5, %v998_v4  ;;  %v965_v37 = vsel %vm963_vm7, %v964_v15, %v962_v54  ;;  %v1015_v52 = vmul.f32 0.2, %v953_v25 }
 0x122   : > { %v983_v35 = vadd.f32 1.0, %v979_v7  ;;  %v1003_v46 = vadd.f32 0.5, %v999_v41  ;;  %v977_v44 = vsel %vm975_vm9, %v976_v2, %v974_v30  ;;  %v980_v59 = vmul.f32 0.1, %v965_v37 }
 0x123   : > { %v986_v39 = vmul.f32 0.5, %v982_v43  ;;  %v1018_v33 = vadd.f32 1.0, %v1014_v28  ;;  %v981_v17 = vmul.f32 0.1, %v977_v44  ;;  %v1000_v55 = vmul.f32 0.05, %v965_v37 }
 0x124   : > { %v987_v6 = vmul.f32 0.5, %v983_v35  ;;  %v1006_v53 = vmul.f32 %v1002_v63, %v2096_v36  ;;  %v984_v24 = vadd.f32 1.0, %v980_v59  ;;  %v1001_v26 = vmul.f32 0.05, %v977_v44 }
 0x125   : > { %v994_v50 = vmul.f32 %v990_v42, %v986_v39  ;;  %v1007_v56 = vmul.f32 %v1003_v46, %v2098_v40  ;;  %v985_v20 = vadd.f32 1.0, %v981_v17  ;;  %v1004_v31 = vadd.f32 0.5, %v1000_v55  ;;  %v416_v40 = vld [vmem:[%s2176_s3] sm:$0xff] }
 0x126   : > { %v995_v14 = vmul.f32 %v991_v3, %v987_v6  ;;  %v988_v0 = vmul.f32 0.5, %v984_v24  ;;  %v1005_v19 = vadd.f32 0.5, %v1001_v26  ;;  %v1016_v29 = vmul.f32 0.2, %v965_v37 }
 0x127   : > { %v1010_v34 = vadd.f32 %v1006_v53, %v994_v50  ;;  %v1019_v1 = vadd.f32 1.0, %v1015_v52  ;;  %v989_v12 = vmul.f32 0.5, %v985_v20  ;;  %v1017_v58 = vmul.f32 0.2, %v977_v44 }
 0x128   : > { %v1011_v47 = vadd.f32 %v1007_v56, %v995_v14  ;;  %v996_v42 = vmul.f32 %v2118_v22, %v988_v0  ;;  %v1008_v36 = vmul.f32 %v1004_v31, %v2100_v5  ;;  %v1009_v51 = vmul.f32 %v1005_v19, %v2102_v32  ;;  %v418_v5 = vld [vmem:[%s2176_s3 + $0x10] sm:$0xff] }
 0x129   : > { %v1022_v13 = vmul.f32 %v1018_v33, %v1010_v34  ;;  %v997_v27 = vmul.f32 %v2120_v45, %v989_v12  ;;  %v1020_v21 = vadd.f32 1.0, %v1016_v29  ;;  %v1021_v18 = vadd.f32 1.0, %v1017_v58 }
 0x12a   : > { %v1023_v3 = vmul.f32 %v1019_v1, %v1011_v47  ;;  %v1012_v61 = vadd.f32 %v1008_v36, %v996_v42 }
 0x12b   : > { %v1013_v22 = vadd.f32 %v1009_v51, %v997_v27  ;;  %v1026_v62 = vmul.f32 %v1022_v13, %v416_v40 }
 0x12c   : > { %v1024_v45 = vmul.f32 %v1020_v21, %v1012_v61  ;;  %v1027_v9 = vmul.f32 %v1023_v3, %v417_v16 }
 0x12d   : > { %v1025_v32 = vmul.f32 %v1021_v18, %v1013_v22 }
 0x12e   : > { %v1028_v23 = vmul.f32 %v1024_v45, %v418_v5 }
 0x12f   : > { %v1029_v10 = vmul.f32 %v1025_v32, %v419_v60 }
 0x130   : > { %v1036_v48 = vadd.f32 %v1028_v23, %v1026_v62 }
 0x131   : > { %v1037_v8 = vadd.f32 %v1029_v10, %v1027_v9 }
 0x132   : > { %1042 = vst [vmem:[%s393_s6] sm:$0xff] %v1036_v48 }
 0x133   : > { %1043 = vst [vmem:[%s393_s6 + $0x8] sm:$0xff] %v1037_v8 }
 0x134 PF: > { %s15_s20 = sadd.s32 1, %s1285_s20   ;;  %s2211_s18 = smov %s1281_s19 }
 0x135   : > { %p12_p5 = scmp.ge.s32.totalorder %s15_s20, 4   ;;  %s2212_s19 = smov %s2214_s21 }
 0x137   :  { %14 = sbr.rel (!%p12_p5) target bundleno = 2 (0x2), region = 85 }

// kernel: learnable_adaptive_elasticity_loss.4
= control target key start
LH: loop header
LB: loop body
LE: loop exit
PB: predicated region body
PF: predicated region fallthrough
CT: control target
= control target key end

     0   :  { %s758_s18 = smov 0   ;;  %s760_s19 = smov 0   ;;  %s917_s0 = inlined_call_operand.vmem [shape: f32[2,3,8,128], index: 0, kind: input, shape index: {}]   ;;  %s918_s1 = inlined_call_operand.vmem [shape: f32[2,1,3,128], index: 1, kind: input, shape index: {}]   ;;  %s919_s2 = inlined_call_operand.vmem [shape: f32[2,1,3,128], index: 2, kind: input, shape index: {}]   ;;  %s920_s3 = inlined_call_operand.vmem [shape: f32[8,128], index: 3, kind: input, shape index: {}]   ;;  %s921_s4 = inlined_call_operand.vmem [shape: f32[8,128], index: 4, kind: input, shape index: {}]   ;;  %s922_s5 = inlined_call_operand.vmem [shape: f32[2,1,8,128], index: 5, kind: output, shape index: {}]  }
   0x1   :  { %s762_s20 = smov 0  }
   0x2 LB: > { %s34_s21 = sadd.s32 1, %s716_s19  ;;  %p655_p0 = scmp.ge.s32.totalorder %s720_s20, 1  ;;  %s720_s20 = sphi %s762_s20, %s15_s20   ;;  %s716_s19 = sphi %s760_s19, %s932_s19   ;;  %s712_s18 = sphi %s758_s18, %s931_s18  }
   0x3   : > { %p36_p1 = scmp.ge.s32.totalorder %s34_s21, 2  ;;  %p266_p2 = scmp.lt.s32.totalorder %s720_s20, 3 }
   0x5   : > { %s934_s21 = smov (%p36_p1, %s34_s21), 0  ;;  %p267_p3 = pnand %p655_p0, %p266_p2 }
   0x6   : > { %p322_p4 = scmp.lt.s32.totalorder (!%p267_p3), %s712_s18, 1  ;;  %s722_s26 = smov (!%p267_p3), 127  }
   0x7   : > { %270 = sbr.rel (%p267_p3) target bundleno = 205 (0xcd), region = 40  ;;  %s723_s27 = smov (!%p267_p3), 120  }
   0x8   : > { %s724_s28 = smov (!%p267_p3), 1   ;;  %s725_s29 = smov (!%p267_p3), 8  }
   0xc   : > { %s936_s18 = smov (!%p322_p4, %s712_s18), 1  ;;  %v365_v4 = vlaneseq  ;;  %v363_v5 = vld [vmem:[%s921_s4] sm:$0xff]  ;;  %v726_v9 = vmov 0   ;;  %v727_v35 = vmov 0.5  }
   0xd   : > { %s664_s22 = smul.u32 24, %s936_s18  ;;  %s657_s30 = sshll.u32 %s936_s18, 2  ;;  %vm364_vm0 = vcmp.gt.f32.partialorder %v363_v5, 0.0  ;;  %v404_v38 = vperm.slane %v363_v5, 1  ;;  %v417_v45 = vperm.slane %v363_v5, 0 }
   0xe   : > { %s347_s10 = scalar_lea.vmem %s919_s2, %s657_s30  ;;  %s338_s13 = scalar_lea.vmem %s918_s1, %s657_s30  ;;  %v812_v6 = vshrl.u32 %v365_v4, 7  ;;  %v396_v10 = vsel %vm364_vm0, 1, %v726_v9 }
   0xf   : > { %s329_s25 = scalar_lea.vmem %s917_s0, %s664_s22  ;;  %v814_v7 = vld [vmem:[%s347_s10] sm:$0x7]  ;;  %v410_v21 = vperm.slane %v396_v10, 2  ;;  %v397_v22 = vperm.slane %v396_v10, 4  ;;  %v400_v24 = vperm.slane %v396_v10, 5  ;;  %v413_v25 = vperm.slane %v396_v10, 3 }
  0x10   : > { %v782_v0 = vld [vmem:[%s329_s25] sm:$0xff]  ;;  %v784_v1 = vld [vmem:[%s329_s25 + $0x8] sm:$0xff]  ;;  %v792_v2 = vld [vmem:[%s329_s25 + $0x10] sm:$0xff]  ;;  %v448_v12 = vperm.slane %v814_v7, 2  ;;  %vm370_vm1 = vcmp.eq.s32.totalorder %v812_v6, 0  ;;  %vm371_vm2 = vcmp.eq.s32.totalorder %v812_v6, 7 }
  0x11   : > { %406 = vrot.lane.b32.xlu1 %v782_v0, %s722_s26  ;;  %392 = vrot.lane.b32.xlu0 %v782_v0, %s723_s27  ;;  %v816_v8 = vld [vmem:[%s338_s13] sm:$0x7]  ;;  %v447_v11 = vrot.slane %v792_v2, 1  ;;  %v450_v15 = vrot.slane %v792_v2, 7  ;;  %v421_v17 = vrot.slane %v784_v1, 1  ;;  %v422_v18 = vperm.slane %v814_v7, 1  ;;  %vm372_vm3 = vmor %vm370_vm1, %vm371_vm2 }
  0x12   : > { %437 = vrot.lane.b32.xlu2 %v784_v1, %s722_s26  ;;  %v451_v16 = vperm.slane %v816_v8, 2  ;;  %v424_v19 = vrot.slane %v784_v1, 7  ;;  %v425_v20 = vperm.slane %v816_v8, 1  ;;  %vm840_vm4 = vcmp.eq.s32.totalorder %v410_v21, 1  ;;  %s659_s16 = sshll.u32 %s936_s18, 3 }
  0x13   : > { %v449_v26 = vsel %vm371_vm2, %v448_v12, %v447_v11  ;;  %v423_v28 = vsel %vm371_vm2, %v422_v18, %v421_v17  ;;  %vm844_vm5 = vcmp.eq.s32.totalorder %v397_v22, 1  ;;  %vm848_vm6 = vcmp.eq.s32.totalorder %v400_v24, 1  ;;  %s361_s23 = scalar_lea.vmem %s922_s5, %s659_s16 }
  0x14   : > { %v452_v27 = vsel %vm370_vm1, %v451_v16, %v450_v15  ;;  %v426_v29 = vsel %vm370_vm1, %v425_v20, %v424_v19  ;;  %vm852_vm7 = vcmp.eq.s32.totalorder %v413_v25, 1  ;;  %v373_v36 = vsel %vm372_vm3, 1.0, %v727_v35 }
  0x15   : > { %v453_v33 = vsub.f32 %v449_v26, %v452_v27  ;;  %v427_v39 = vsub.f32 %v423_v28, %v426_v29  ;;  %v383_v55 = vperm.slane %v814_v7, 0  ;;  %v388_v56 = vperm.slane %v816_v8, 0 }
  0x16   : > { %v380_v57 = vrot.slane %v782_v0, 1  ;;  %v385_v58 = vrot.slane %v782_v0, 7 }
  0x17   : > { %v454_v50 = vmul.f32 %v453_v33, %v373_v36  ;;  %v428_v53 = vmul.f32 %v427_v39, %v373_v36 }
  0x18   : > { %v384_v5 = vsel %vm371_vm2, %v383_v55, %v380_v57  ;;  %v389_v7 = vsel %vm370_vm1, %v388_v56, %v385_v58 }
  0x19   : > { %408 = vrot.lane.b32.xlu1 %v782_v0, %s724_s28  ;;  %394 = vrot.lane.b32.xlu0 %v782_v0, %s725_s29  ;;  %v390_v12 = vsub.f32 %v384_v5, %v389_v7 }
  0x1a   : > { %439 = vrot.lane.b32.xlu2 %v784_v1, %s724_s28 }
  0x1b   : > { %v391_v20 = vmul.f32 %v390_v12, %v373_v36 }
  0x1d   : > { %v479_v29 = vmul.f32 %v391_v20, %v391_v20 }
  0x21   : > { %457 = vrot.lane.b32.xlu1 %v792_v2, %s725_s29  ;;  %455 = vrot.lane.b32.xlu0 %v792_v2, %s723_s27 }
  0x22   : > { %429 = vrot.lane.b32.xlu2 %v784_v1, %s723_s27 }
  0x29   : > { %431 = vrot.lane.b32.xlu0 %v784_v1, %s725_s29  ;;  %463 = vrot.lane.b32.xlu1 %v792_v2, %s722_s26 }
  0x2a   : > { %465 = vrot.lane.b32.xlu2 %v792_v2, %s724_s28 }
  0x6c   : > { %v801_v3 = vpop.permute.xlu2 %437 }
  0x6d   : > { %v441_v49 = vsel %vm840_vm4, %v784_v1, %v801_v3 }
  0x74   : > { %v440_v23 = vpop.permute.xlu2 %439 }
  0x75   : > { %v442_v51 = vsel %vm852_vm7, %v784_v1, %v440_v23 }
  0x76   : > { %v443_v59 = vsub.f32 %v441_v49, %v442_v51 }
  0x78   : > { %v444_v8 = vmul.f32 %v443_v59, %v417_v45  ;;  %v376_v59 = vld [vmem:[%s920_s3] sm:$0xff] }
  0x7c   : > { %v430_v48 = vpop.permute.xlu2 %429 }
  0x7d   : > { %v433_v6 = vsel %vm844_vm5, %v784_v1, %v430_v48 }
  0x83   : > { %v407_v13 = vpop.permute.xlu1 %406  ;;  %v393_v14 = vpop.permute.xlu0 %392 }
  0x84   : > { %v412_v41 = vsel %vm840_vm4, %v782_v0, %v407_v13  ;;  %v399_v42 = vsel %vm844_vm5, %v782_v0, %v393_v14  ;;  %v466_v13 = vpop.permute.xlu2 %465 }
  0x85   : > { %v468_v15 = vsel %vm852_vm7, %v792_v2, %v466_v13 }
  0x8b   : > { %v409_v37 = vpop.permute.xlu1 %408  ;;  %v395_v40 = vpop.permute.xlu0 %394 }
  0x8c   : > { %v415_v43 = vsel %vm852_vm7, %v782_v0, %v409_v37  ;;  %v402_v44 = vsel %vm848_vm6, %v782_v0, %v395_v40 }
  0x8d   : > { %v416_v46 = vsub.f32 %v412_v41, %v415_v43  ;;  %v403_v47 = vsub.f32 %v399_v42, %v402_v44 }
  0x8f   : > { %v418_v52 = vmul.f32 %v417_v45, %v416_v46  ;;  %v405_v54 = vmul.f32 %v404_v38, %v403_v47 }
  0x91   : > { %v473_v60 = vadd.f32 %v454_v50, %v418_v52  ;;  %v471_v61 = vadd.f32 %v428_v53, %v405_v54 }
  0x93   : > { %v458_v62 = vpop.permute.xlu1 %457  ;;  %v456_v63 = vpop.permute.xlu0 %455  ;;  %v474_v9 = vmul.f32 0.5, %v473_v60  ;;  %v472_v10 = vmul.f32 0.5, %v471_v61 }
  0x94   : > { %v460_v3 = vsel %vm848_vm6, %v792_v2, %v458_v62  ;;  %v459_v4 = vsel %vm844_vm5, %v792_v2, %v456_v63 }
  0x95   : > { %v461_v0 = vsub.f32 %v459_v4, %v460_v3  ;;  %v485_v16 = vmul.f32 %v474_v9, %v474_v9  ;;  %v484_v17 = vmul.f32 %v472_v10, %v472_v10 }
  0x97   : > { %v462_v11 = vmul.f32 %v461_v0, %v404_v38  ;;  %v486_v27 = vadd.f32 %v485_v16, %v484_v17 }
  0x99   : > { %v475_v14 = vadd.f32 %v462_v11, %v444_v8 }
  0x9b   : > { %v476_v18 = vmul.f32 0.5, %v475_v14  ;;  %v432_v19 = vpop.permute.xlu0 %431  ;;  %v464_v21 = vpop.permute.xlu1 %463 }
  0x9c   : > { %v434_v22 = vsel %vm848_vm6, %v784_v1, %v432_v19  ;;  %v467_v23 = vsel %vm840_vm4, %v792_v2, %v464_v21 }
  0x9d   : > { %v487_v24 = vmul.f32 %v476_v18, %v476_v18  ;;  %v435_v25 = vsub.f32 %v433_v6, %v434_v22  ;;  %v469_v26 = vsub.f32 %v467_v23, %v468_v15 }
  0x9f   : > { %v436_v28 = vmul.f32 %v435_v25, %v404_v38  ;;  %v470_v33 = vmul.f32 %v469_v26, %v417_v45  ;;  %v488_v34 = vadd.f32 %v487_v24, %v486_v27 }
  0xa1   : > { %v480_v35 = vmul.f32 %v436_v28, %v436_v28  ;;  %v482_v36 = vmul.f32 %v470_v33, %v470_v33  ;;  %v489_v37 = vmul.f32 2.0, %v488_v34  ;;  %v477_v43 = vadd.f32 %v436_v28, %v391_v20 }
  0xa3   : > { %v481_v31 = vadd.f32 %v480_v35, %v479_v29  ;;  %v478_v47 = vadd.f32 %v477_v43, %v470_v33 }
  0xa5   : > { %v483_v39 = vadd.f32 %v482_v36, %v481_v31  ;;  %v506_v53 = vmul.f32 %v478_v47, %v478_v47 }
  0xa7   : > { %v490_v40 = vadd.f32 %v489_v37, %v483_v39 }
  0xa9   : > { %696 = vrsqrt.f32 %v490_v40  ;;  %vm498_vm8 = vcmp.eq.f32.partialorder %v490_v40, inf  ;;  %v501_v38 = vand.u32 2147483648, %v490_v40  ;;  %vm500_vm9 = vcmp.eq.f32.partialorder %v490_v40, 0.0 }
  0xaf   : > { %v697_v1 = vpop.eup %696 }
  0xb0   : > { %v492_v32 = vmul.f32 %v697_v1, %v490_v40 }
  0xb2   : > { %v493_v41 = vmul.f32 %v697_v1, %v492_v32 }
  0xb4   : > { %v494_v30 = vmul.f32 0.5, %v493_v41 }
  0xb6   : > { %v495_v2 = vsub.f32 1.5, %v494_v30 }
  0xb8   : > { %v496_v42 = vmul.f32 %v697_v1, %v495_v2 }
  0xba   : > { %v497_v44 = vmul.f32 %v496_v42, %v490_v40 }
  0xbc   : > { %v499_v46 = vsel %vm498_vm8, %v490_v40, %v497_v44 }
  0xbd   : > { %v502_v45 = vsel %vm500_vm9, %v501_v38, %v499_v46 }
  0xbe   : > { %v503_v48 = vmul.f32 0.1, %v502_v45  ;;  %v508_v49 = vmul.f32 0.05, %v502_v45  ;;  %v512_v54 = vmul.f32 0.2, %v502_v45 }
  0xc0   : > { %v504_v50 = vadd.f32 1.0, %v503_v48  ;;  %v509_v51 = vadd.f32 0.5, %v508_v49  ;;  %v513_v58 = vadd.f32 1.0, %v512_v54 }
  0xc2   : > { %v505_v52 = vmul.f32 0.5, %v504_v50  ;;  %v510_v56 = vmul.f32 %v509_v51, %v490_v40 }
  0xc4   : > { %v507_v55 = vmul.f32 %v506_v53, %v505_v52 }
  0xc6   : > { %v511_v57 = vadd.f32 %v510_v56, %v507_v55 }
  0xc8   : > { %v514_v60 = vmul.f32 %v513_v58, %v511_v57 }
  0xca   : > { %v515_v61 = vmul.f32 %v514_v60, %v376_v59 }
  0xcc   : > { %523 = vst [vmem:[%s361_s23] sm:$0xff] %v515_v61 }
  0xcd PF: > { %s15_s20 = sadd.s32 1, %s720_s20   ;;  %s931_s18 = smov %s716_s19 }
  0xce   : > { %p12_p5 = scmp.ge.s32.totalorder %s15_s20, 4   ;;  %s932_s19 = smov %s934_s21 }
  0xd0   :  { %14 = sbr.rel (!%p12_p5) target bundleno = 2 (0x2), region = 85 }

// kernel: learnable_adaptive_elasticity_loss.5
= control target key start
LH: loop header
LB: loop body
LE: loop exit
PB: predicated region body
PF: predicated region fallthrough
CT: control target
= control target key end

     0   :  { %s778_s18 = smov 0   ;;  %s780_s19 = smov 0   ;;  %s928_s0 = inlined_call_operand.vmem [shape: f32[2,3,4,128], index: 0, kind: input, shape index: {}]   ;;  %s929_s1 = inlined_call_operand.vmem [shape: f32[2,1,3,128], index: 1, kind: input, shape index: {}]   ;;  %s930_s2 = inlined_call_operand.vmem [shape: f32[2,1,3,128], index: 2, kind: input, shape index: {}]   ;;  %s931_s3 = inlined_call_operand.vmem [shape: f32[4,128], index: 3, kind: input, shape index: {}]   ;;  %s932_s4 = inlined_call_operand.vmem [shape: f32[8,128], index: 4, kind: input, shape index: {}]   ;;  %s933_s5 = inlined_call_operand.vmem [shape: f32[2,1,8,128], index: 5, kind: output, shape index: {}]  }
   0x1   :  { %s782_s20 = smov 0  }
   0x2 LB: > { %s34_s21 = sadd.s32 1, %s735_s19  ;;  %p674_p0 = scmp.ge.s32.totalorder %s739_s20, 1  ;;  %s739_s20 = sphi %s782_s20, %s15_s20   ;;  %s735_s19 = sphi %s780_s19, %s943_s19   ;;  %s731_s18 = sphi %s778_s18, %s942_s18  }
   0x3   : > { %p36_p1 = scmp.ge.s32.totalorder %s34_s21, 2  ;;  %p266_p2 = scmp.lt.s32.totalorder %s739_s20, 3 }
   0x5   : > { %s945_s21 = smov (%p36_p1, %s34_s21), 0  ;;  %p267_p3 = pnand %p674_p0, %p266_p2 }
   0x6   : > { %p322_p4 = scmp.lt.s32.totalorder (!%p267_p3), %s731_s18, 1  ;;  %s741_s26 = smov (!%p267_p3), 127  }
   0x7   : > { %270 = sbr.rel (%p267_p3) target bundleno = 220 (0xdc), region = 40  ;;  %s742_s27 = smov (!%p267_p3), 124  }
   0x8   : > { %s743_s28 = smov (!%p267_p3), 1   ;;  %s744_s29 = smov (!%p267_p3), 4  }
   0xc   : > { %s947_s18 = smov (!%p322_p4, %s731_s18), 1  ;;  %v363_v3 = vld [vmem:[%s932_s4] sm:$0xff]  ;;  %v365_v5 = vlaneseq  ;;  %v745_v8 = vmov 0   ;;  %vm384_vm1 = vcmask 1042432   ;;  %vm388_vm2 = vcmask 1040384  }
   0xd   : > { %s683_s22 = smul.u32 12, %s947_s18  ;;  %s676_s30 = sshll.u32 %s947_s18, 2  ;;  %vm364_vm0 = vcmp.gt.f32.partialorder %v363_v3, 0.0  ;;  %v746_v22 = vmov 0.0   ;;  %v747_v36 = vmov 0.5   ;;  %v404_v39 = vperm.slane %v363_v3, 1 }
   0xe   : > { %s338_s10 = scalar_lea.vmem %s929_s1, %s676_s30  ;;  %s347_s13 = scalar_lea.vmem %s930_s2, %s676_s30  ;;  %v396_v9 = vsel %vm364_vm0, 1, %v745_v8  ;;  %v366_v10 = vshrl.u32 %v365_v5, 7  ;;  %v417_v46 = vperm.slane %v363_v3, 0  ;;  %vm533_vm12 = vcmask 1043456  }
   0xf   : > { %s329_s25 = scalar_lea.vmem %s928_s0, %s683_s22  ;;  %s678_s14 = sshll.u32 %s947_s18, 3  ;;  %v833_v6 = vld [vmem:[%s338_s10] sm:$0x7]  ;;  %v410_v11 = vperm.slane %v396_v9, 2  ;;  %v397_v23 = vperm.slane %v396_v9, 4  ;;  %v400_v25 = vperm.slane %v396_v9, 5 }
  0x10   : > { %v802_v0 = vld [vmem:[%s329_s25] sm:$0xf]  ;;  %v804_v1 = vld [vmem:[%s329_s25 + $0x4] sm:$0xf]  ;;  %v812_v2 = vld [vmem:[%s329_s25 + $0x8] sm:$0xf]  ;;  %s840_s17 = scalar_lea.vmem %s933_s5, %s678_s14 }
  0x11   : > { %406 = vrot.lane.b32.xlu1 %v802_v0, %s741_s26  ;;  %392 = vrot.lane.b32.xlu0 %v802_v0, %s742_s27  ;;  %v835_v7 = vld [vmem:[%s347_s13] sm:$0x7]  ;;  %v454_v12 = vrot.slane %v812_v2, 1  ;;  %v459_v16 = vrot.slane %v833_v6, 2  ;;  %v461_v17 = vrot.slane %v812_v2, 7  ;;  %v422_v18 = vrot.slane %v804_v1, 1  ;;  %531 = vst [vmem:[%s840_s17] sm:$0xff] %v746_v22 }
  0x12   : > { %443 = vrot.lane.b32.xlu2 %v804_v1, %s741_s26  ;;  %v456_v15 = vrot.slane %v835_v7, 7  ;;  %v424_v19 = vrot.slane %v835_v7, 6  ;;  %v428_v20 = vrot.slane %v833_v6, 1  ;;  %v430_v21 = vrot.slane %v804_v1, 7 }
  0x13   : > { %vm370_vm3 = vcmp.eq.s32.totalorder %v366_v10, 0  ;;  %vm371_vm4 = vcmp.eq.s32.totalorder %v366_v10, 3  ;;  %v413_v26 = vperm.slane %v396_v9, 3  ;;  %v463_v28 = vsel %vm388_vm2, %v459_v16, %v461_v17 }
  0x14   : > { %v458_v27 = vsel %vm384_vm1, %v454_v12, %v456_v15  ;;  %vm372_vm5 = vmor %vm370_vm3, %vm371_vm4  ;;  %v426_v29 = vsel %vm384_vm1, %v422_v18, %v424_v19  ;;  %v432_v30 = vsel %vm388_vm2, %v428_v20, %v430_v21  ;;  %vm855_vm6 = vcmp.eq.s32.totalorder %v410_v11, 1 }
  0x15   : > { %vm859_vm7 = vcmp.eq.s32.totalorder %v397_v23, 1  ;;  %vm863_vm8 = vcmp.eq.s32.totalorder %v400_v25, 1  ;;  %v464_v34 = vsub.f32 %v458_v27, %v463_v28  ;;  %vm867_vm9 = vcmp.eq.s32.totalorder %v413_v26, 1 }
  0x16   : > { %v373_v37 = vsel %vm372_vm5, 1.0, %v747_v36  ;;  %v433_v40 = vsub.f32 %v426_v29, %v432_v30  ;;  %v382_v56 = vrot.slane %v835_v7, 5  ;;  %v379_v57 = vrot.slane %v802_v0, 1 }
  0x17   : > { %v465_v51 = vmul.f32 %v464_v34, %v373_v37  ;;  %v386_v58 = vrot.slane %v802_v0, 7 }
  0x18   : > { %v434_v54 = vmul.f32 %v433_v40, %v373_v37  ;;  %v385_v5 = vsel %vm384_vm1, %v379_v57, %v382_v56 }
  0x19   : > { %408 = vrot.lane.b32.xlu1 %v802_v0, %s743_s28  ;;  %394 = vrot.lane.b32.xlu0 %v802_v0, %s744_s29  ;;  %v389_v7 = vsel %vm388_vm2, %v833_v6, %v386_v58 }
  0x1a   : > { %445 = vrot.lane.b32.xlu2 %v804_v1, %s743_s28  ;;  %v390_v12 = vsub.f32 %v385_v5, %v389_v7 }
  0x1c   : > { %v391_v20 = vmul.f32 %v390_v12, %v373_v37 }
  0x1e   : > { %v490_v29 = vmul.f32 %v391_v20, %v391_v20 }
  0x21   : > { %468 = vrot.lane.b32.xlu1 %v812_v2, %s744_s29  ;;  %466 = vrot.lane.b32.xlu0 %v812_v2, %s742_s27 }
  0x22   : > { %435 = vrot.lane.b32.xlu2 %v804_v1, %s742_s27 }
  0x29   : > { %437 = vrot.lane.b32.xlu0 %v804_v1, %s744_s29  ;;  %474 = vrot.lane.b32.xlu1 %v812_v2, %s741_s26 }
  0x2a   : > { %476 = vrot.lane.b32.xlu2 %v812_v2, %s743_s28 }
  0x6c   : > { %v824_v4 = vpop.permute.xlu2 %443 }
  0x6d   : > { %v447_v50 = vsel %vm855_vm6, %v804_v1, %v824_v4 }
  0x74   : > { %v446_v24 = vpop.permute.xlu2 %445 }
  0x75   : > { %v448_v52 = vsel %vm867_vm9, %v804_v1, %v446_v24 }
  0x76   : > { %v449_v59 = vsub.f32 %v447_v50, %v448_v52 }
  0x7c   : > { %v436_v49 = vpop.permute.xlu2 %435 }
  0x7d   : > { %v439_v6 = vsel %vm859_vm7, %v804_v1, %v436_v49 }
  0x83   : > { %v407_v13 = vpop.permute.xlu1 %406  ;;  %v393_v14 = vpop.permute.xlu0 %392 }
  0x84   : > { %v412_v42 = vsel %vm855_vm6, %v802_v0, %v407_v13  ;;  %v399_v43 = vsel %vm859_vm7, %v802_v0, %v393_v14  ;;  %v477_v13 = vpop.permute.xlu2 %476 }
  0x85   : > { %v479_v15 = vsel %vm867_vm9, %v812_v2, %v477_v13 }
  0x8b   : > { %v409_v38 = vpop.permute.xlu1 %408  ;;  %v395_v41 = vpop.permute.xlu0 %394 }
  0x8c   : > { %v415_v44 = vsel %vm867_vm9, %v802_v0, %v409_v38  ;;  %v402_v45 = vsel %vm863_vm8, %v802_v0, %v395_v41  ;;  %v450_v0 = vmul.f32 %v449_v59, %v417_v46  ;;  %v376_v59 = vld [vmem:[%s931_s3] sm:$0xf] }
  0x8d   : > { %v416_v47 = vsub.f32 %v412_v42, %v415_v44  ;;  %v403_v48 = vsub.f32 %v399_v43, %v402_v45 }
  0x8f   : > { %v418_v53 = vmul.f32 %v417_v46, %v416_v47  ;;  %v405_v55 = vmul.f32 %v404_v39, %v403_v48 }
  0x91   : > { %v484_v60 = vadd.f32 %v465_v51, %v418_v53  ;;  %v482_v61 = vadd.f32 %v434_v54, %v405_v55 }
  0x93   : > { %v469_v62 = vpop.permute.xlu1 %468  ;;  %v467_v63 = vpop.permute.xlu0 %466  ;;  %v485_v9 = vmul.f32 0.5, %v484_v60  ;;  %v483_v10 = vmul.f32 0.5, %v482_v61 }
  0x94   : > { %v471_v3 = vsel %vm863_vm8, %v812_v2, %v469_v62  ;;  %v470_v4 = vsel %vm859_vm7, %v812_v2, %v467_v63 }
  0x95   : > { %v472_v8 = vsub.f32 %v470_v4, %v471_v3  ;;  %v496_v16 = vmul.f32 %v485_v9, %v485_v9  ;;  %v495_v17 = vmul.f32 %v483_v10, %v483_v10 }
  0x97   : > { %v473_v11 = vmul.f32 %v472_v8, %v404_v39  ;;  %v497_v27 = vadd.f32 %v496_v16, %v495_v17  ;;  %v532_v8 = vld [vmem:[%s840_s17] sm:$0x1] }
  0x99   : > { %v486_v14 = vadd.f32 %v473_v11, %v450_v0 }
  0x9b   : > { %v487_v18 = vmul.f32 0.5, %v486_v14  ;;  %v438_v19 = vpop.permute.xlu0 %437  ;;  %v475_v21 = vpop.permute.xlu1 %474 }
  0x9c   : > { %v440_v22 = vsel %vm863_vm8, %v804_v1, %v438_v19  ;;  %v478_v23 = vsel %vm855_vm6, %v812_v2, %v475_v21 }
  0x9d   : > { %v498_v24 = vmul.f32 %v487_v18, %v487_v18  ;;  %v441_v25 = vsub.f32 %v439_v6, %v440_v22  ;;  %v480_v26 = vsub.f32 %v478_v23, %v479_v15 }
  0x9f   : > { %v442_v28 = vmul.f32 %v441_v25, %v404_v39  ;;  %v481_v30 = vmul.f32 %v480_v26, %v417_v46  ;;  %v499_v34 = vadd.f32 %v498_v24, %v497_v27 }
  0xa1   : > { %v491_v35 = vmul.f32 %v442_v28, %v442_v28  ;;  %v493_v36 = vmul.f32 %v481_v30, %v481_v30  ;;  %v500_v37 = vmul.f32 2.0, %v499_v34  ;;  %v488_v43 = vadd.f32 %v442_v28, %v391_v20 }
  0xa3   : > { %v492_v32 = vadd.f32 %v491_v35, %v490_v29  ;;  %v489_v47 = vadd.f32 %v488_v43, %v481_v30 }
  0xa5   : > { %v494_v38 = vadd.f32 %v493_v36, %v492_v32  ;;  %v517_v53 = vmul.f32 %v489_v47, %v489_v47 }
  0xa7   : > { %v501_v40 = vadd.f32 %v500_v37, %v494_v38 }
  0xa9   : > { %715 = vrsqrt.f32 %v501_v40  ;;  %vm509_vm10 = vcmp.eq.f32.partialorder %v501_v40, inf  ;;  %v512_v39 = vand.u32 2147483648, %v501_v40  ;;  %vm511_vm11 = vcmp.eq.f32.partialorder %v501_v40, 0.0 }
  0xaf   : > { %v716_v1 = vpop.eup %715 }
  0xb0   : > { %v503_v33 = vmul.f32 %v716_v1, %v501_v40 }
  0xb2   : > { %v504_v41 = vmul.f32 %v716_v1, %v503_v33 }
  0xb4   : > { %v505_v31 = vmul.f32 0.5, %v504_v41 }
  0xb6   : > { %v506_v2 = vsub.f32 1.5, %v505_v31 }
  0xb8   : > { %v507_v42 = vmul.f32 %v716_v1, %v506_v2 }
  0xba   : > { %v508_v44 = vmul.f32 %v507_v42, %v501_v40 }
  0xbc   : > { %v510_v45 = vsel %vm509_vm10, %v501_v40, %v508_v44 }
  0xbd   : > { %v513_v46 = vsel %vm511_vm11, %v512_v39, %v510_v45 }
  0xbe   : > { %v514_v48 = vmul.f32 0.1, %v513_v46  ;;  %v519_v49 = vmul.f32 0.05, %v513_v46  ;;  %v523_v54 = vmul.f32 0.2, %v513_v46 }
  0xc0   : > { %v515_v50 = vadd.f32 1.0, %v514_v48  ;;  %v520_v51 = vadd.f32 0.5, %v519_v49  ;;  %v524_v58 = vadd.f32 1.0, %v523_v54 }
  0xc2   : > { %v516_v52 = vmul.f32 0.5, %v515_v50  ;;  %v521_v56 = vmul.f32 %v520_v51, %v501_v40 }
  0xc4   : > { %v518_v55 = vmul.f32 %v517_v53, %v516_v52 }
  0xc6   : > { %v522_v57 = vadd.f32 %v521_v56, %v518_v55 }
  0xc8   : > { %v525_v60 = vmul.f32 %v524_v58, %v522_v57 }
  0xca   : > { %v526_v61 = vmul.f32 %v525_v60, %v376_v59 }
  0xcc   : > { %v534_v62 = vsel %vm533_vm12, %v526_v61, 0.0 }
  0xcd   : > { %v535_v63 = vrot.slane %v534_v62, 4 }
  0xcf   : > { %v536_v3 = vadd.f32 %v535_v63, %v534_v62 }
  0xd1   : > { %v537_v4 = vrot.slane %v536_v3, 2 }
  0xd3   : > { %v538_v5 = vadd.f32 %v537_v4, %v536_v3 }
  0xd5   : > { %v539_v7 = vrot.slane %v538_v5, 1 }
  0xd7   : > { %v540_v0 = vadd.f32 %v539_v7, %v538_v5 }
  0xd9   : > { %v541_v9 = vadd.f32 %v540_v0, %v532_v8 }
  0xdb   : > { %542 = vst [vmem:[%s840_s17] sm:$0x1] %v541_v9 }
  0xdc PF: > { %s15_s20 = sadd.s32 1, %s739_s20   ;;  %s942_s18 = smov %s735_s19 }
  0xdd   : > { %p12_p5 = scmp.ge.s32.totalorder %s15_s20, 4   ;;  %s943_s19 = smov %s945_s21 }
  0xdf   :  { %14 = sbr.rel (!%p12_p5) target bundleno = 2 (0x2), region = 85 }

</bundles_post_ra>
